<compile_context>
chip_gen: v5e
topology: v5e:2x2
jax: 0.10.0
libtpu: 0.0.40
codegen_flags: <defaults>
</compile_context>

<pallas_src>
import functools

import numpy as np
import jax
import jax.numpy as jnp
from jax.experimental import pallas as pl
from jax.experimental.pallas import tpu as pltpu

LANE = 128


def _round_up(x, m):
    return ((x + m - 1) // m) * m


def _pick_tile(n, cap=512):
    """Largest 128-multiple tile <= cap that divides n (n is padded to 128)."""
    best = 128 if n >= 128 else n
    t = 128
    while t <= min(n, cap):
        if n % t == 0:
            best = t
        t += 128
    return best


def _pad2(x, rows, cols):
    r, c = x.shape
    return jnp.pad(x, ((0, rows - r), (0, cols - c)))


@functools.lru_cache(maxsize=None)
def _vmem_limit_bytes():
    """~3/4 of physical VMEM: ~96 MiB on v5e/v6e, ~48 MiB on v7x."""
    cap = 64 * 1024 * 1024
    try:
        info = pltpu.get_tpu_info()
        cap = int(getattr(info, "vmem_capacity_bytes", cap))
    except Exception:
        pass
    return int(max(32 * 1024 * 1024, min(cap * 3 // 4, 100 * 1024 * 1024)))


# ----------------------------------------------------------------------------
# Kernel 1: dense matmul with folded row scaling
#   O = d * (X @ W)    (X, W bf16 on the MXU, f32 accumulate, bf16 output)
# ----------------------------------------------------------------------------
def _dense_scaled_kernel(x_ref, w_ref, d_ref, o_ref, acc_ref):
    kk = pl.program_id(1)

    @pl.when(kk == 0)
    def _():
        acc_ref[...] = jnp.zeros_like(acc_ref)

    acc_ref[...] += jnp.dot(x_ref[...], w_ref[...],
                            preferred_element_type=jnp.float32)

    @pl.when(kk == pl.num_programs(1) - 1)
    def _():
        o_ref[...] = (acc_ref[...] * d_ref[...]).astype(o_ref.dtype)


def dense_scaled(x_bf16, w_bf16, d):
    m, k = x_bf16.shape
    k2, n = w_bf16.shape
    assert k == k2
    tm = _pick_tile(m)
    tk = _pick_tile(k)
    grid = (m // tm, k // tk)
    cost = pl.CostEstimate(
        flops=2 * m * k * n,
        transcendentals=0,
        bytes_accessed=2 * (m * k + k * n + m * n) + 4 * m)
    return pl.pallas_call(
        _dense_scaled_kernel,
        out_shape=jax.ShapeDtypeStruct((m, n), jnp.bfloat16),
        grid=grid,
        in_specs=[
            pl.BlockSpec((tm, tk), lambda i, kk: (i, kk)),   # X tile (bf16)
            pl.BlockSpec((tk, n), lambda i, kk: (kk, 0)),    # W stripe (bf16)
            pl.BlockSpec((tm, 1), lambda i, kk: (i, 0)),     # d rows (f32)
        ],
        out_specs=pl.BlockSpec((tm, n), lambda i, kk: (i, 0)),
        scratch_shapes=[pltpu.VMEM((tm, n), jnp.float32)],
        compiler_params=pltpu.CompilerParams(
            dimension_semantics=("parallel", "arbitrary"),
            vmem_limit_bytes=_vmem_limit_bytes()),
        cost_estimate=cost,
    )(x_bf16, w_bf16, d)


# ----------------------------------------------------------------------------
# Kernel 2: one normalized propagation hop
#   intermediate hop:  S_out = d^2 * (A_hat @ S_in)            (bf16 out)
#   final hop:         H     = act(d * (A_hat @ S_in) + bias)  (bf16/f32 out)
# A_hat is streamed as int8 {0,1} and upcast to bf16 right before the dot.
# S_in (bf16) is resident in VMEM; the row scale / bias only touch the
# finalize, so the inner loop is a pure A-tile x S-slice matmul.
# ----------------------------------------------------------------------------
def _prop_hop_kernel(a_ref, s_ref, r_ref, b_ref, o_ref, acc_ref,
                     *, tk, apply_bias_act, act):
    j = pl.program_id(1)

    @pl.when(j == 0)
    def _():
        acc_ref[...] = jnp.zeros_like(acc_ref)

    a_blk = a_ref[...].astype(jnp.bfloat16)            # int8 {0,1} -> bf16 exact
    off = pl.multiple_of(j * tk, tk)
    s_blk = s_ref[pl.ds(off, tk), :]                   # resident bf16 slice
    acc_ref[...] += jnp.dot(a_blk, s_blk, preferred_element_type=jnp.float32)

    @pl.when(j == pl.num_programs(1) - 1)
    def _():
        res = acc_ref[...] * r_ref[...]                # d^2 (inner) / d (final)
        if apply_bias_act:
            res = res + b_ref[...]
            if act == "relu":
                res = jnp.maximum(res, 0.0)
        o_ref[...] = res.astype(o_ref.dtype)


def prop_hop(a_i8, row_scale, s_bf16, bias, *, apply_bias_act, act, out_dtype):
    n_pad = a_i8.shape[0]
    f = s_bf16.shape[1]
    tm = _pick_tile(n_pad)
    tk = _pick_tile(n_pad)
    grid = (n_pad // tm, n_pad // tk)
    out_bytes = jnp.dtype(out_dtype).itemsize
    cost = pl.CostEstimate(
        flops=2 * n_pad * n_pad * f,
        transcendentals=0,
        bytes_accessed=n_pad * n_pad                       # A (int8)
        + 2 * n_pad * f                                    # S (bf16)
        + out_bytes * n_pad * f                            # out
        + 4 * n_pad + 4 * f)
    kernel = functools.partial(_prop_hop_kernel, tk=tk,
                               apply_bias_act=apply_bias_act, act=act)
    return pl.pallas_call(
        kernel,
        out_shape=jax.ShapeDtypeStruct((n_pad, f), out_dtype),
        grid=grid,
        in_specs=[
            pl.BlockSpec((tm, tk), lambda i, j: (i, j)),      # A tile (int8)
            pl.BlockSpec((n_pad, f), lambda i, j: (0, 0)),    # S resident (bf16)
            pl.BlockSpec((tm, 1), lambda i, j: (i, 0)),       # row scale (f32)
            pl.BlockSpec((1, f), lambda i, j: (0, 0)),        # bias (f32)
        ],
        out_specs=pl.BlockSpec((tm, f), lambda i, j: (i, 0)),
        scratch_shapes=[pltpu.VMEM((tm, f), jnp.float32)],    # f32 accumulator
        compiler_params=pltpu.CompilerParams(
            dimension_semantics=("parallel", "arbitrary"),
            vmem_limit_bytes=_vmem_limit_bytes()),
        cost_estimate=cost,
    )(a_i8, s_bf16, row_scale, bias)


# ----------------------------------------------------------------------------
# Kernel 3: predictor MLP  Linear -> ELU -> Linear  (fused, row-tiled)
# ----------------------------------------------------------------------------
def _predictor_kernel(h_ref, w1_ref, b1_ref, w2_ref, b2_ref, o_ref):
    z = jnp.dot(h_ref[...].astype(jnp.bfloat16), w1_ref[...],
                preferred_element_type=jnp.float32) + b1_ref[...]
    # ELU(alpha=1): exp only on the clamped negative branch.
    z = jnp.where(z > 0.0, z, jnp.exp(jnp.minimum(z, 0.0)) - 1.0)
    o = jnp.dot(z.astype(jnp.bfloat16), w2_ref[...],
                preferred_element_type=jnp.float32) + b2_ref[...]
    o_ref[...] = o


def predictor(h, w1_bf16, b1, w2_bf16, b2):
    n_pad, d_in = h.shape
    d_hid = w1_bf16.shape[1]
    d_out = w2_bf16.shape[1]
    tm = _pick_tile(n_pad)
    grid = (n_pad // tm,)
    cost = pl.CostEstimate(
        flops=2 * n_pad * (d_in * d_hid + d_hid * d_out),
        transcendentals=n_pad * d_hid,
        bytes_accessed=4 * n_pad * (d_in + d_out)
        + 2 * (d_in * d_hid + d_hid * d_out))
    return pl.pallas_call(
        _predictor_kernel,
        out_shape=jax.ShapeDtypeStruct((n_pad, d_out), jnp.float32),
        grid=grid,
        in_specs=[
            pl.BlockSpec((tm, d_in), lambda i: (i, 0)),
            pl.BlockSpec((d_in, d_hid), lambda i: (0, 0)),
            pl.BlockSpec((1, d_hid), lambda i: (0, 0)),
            pl.BlockSpec((d_hid, d_out), lambda i: (0, 0)),
            pl.BlockSpec((1, d_out), lambda i: (0, 0)),
        ],
        out_specs=pl.BlockSpec((tm, d_out), lambda i: (i, 0)),
        compiler_params=pltpu.CompilerParams(
            dimension_semantics=("parallel",),
            vmem_limit_bytes=_vmem_limit_bytes()),
        cost_estimate=cost,
    )(h, w1_bf16, b1, w2_bf16, b2)


# ----------------------------------------------------------------------------
# Glue: params, augmentation, pruning, adjacency prep
# ----------------------------------------------------------------------------
def init_params(key, in_dim, hidden_dim, out_dim, pred_dim):
    ks = jax.random.split(key, 8)

    def lin(k, fan_in, fan_out):
        s = 1.0 / np.sqrt(fan_in)
        return jax.random.uniform(k, (fan_in, fan_out), jnp.float32, -s, s)

    return {
        # encoder (2-layer GCN)
        "w1": lin(ks[0], in_dim, hidden_dim),
        "b1": jnp.zeros((1, hidden_dim), jnp.float32),
        "w2": lin(ks[1], hidden_dim, out_dim),
        "b2": jnp.zeros((1, out_dim), jnp.float32),
        # predictor: Linear(out,pred) -> ELU -> Linear(pred,out)
        "pw1": lin(ks[2], out_dim, pred_dim),
        "pb1": jax.random.uniform(ks[3], (1, pred_dim), jnp.float32,
                                  -1.0 / np.sqrt(out_dim), 1.0 / np.sqrt(out_dim)),
        "pw2": lin(ks[4], pred_dim, out_dim),
        "pb2": jax.random.uniform(ks[5], (1, out_dim), jnp.float32,
                                  -1.0 / np.sqrt(pred_dim), 1.0 / np.sqrt(pred_dim)),
    }


def augment(key, x, adj, feat_drop=0.2, edge_drop=0.2):
    """Feature-masking + edge-dropping augmentation (one view)."""
    # TODO(synk): approximates the external GraphAugmentor; symmetrization via
    # max(mask, mask.T) keeps an edge if either direction survives.
    k1, k2 = jax.random.split(key)
    feat_mask = (jax.random.uniform(k1, (1, x.shape[1])) > feat_drop).astype(jnp.float32)
    edge_mask = (jax.random.uniform(k2, adj.shape) > edge_drop).astype(jnp.float32)
    edge_mask = jnp.maximum(edge_mask, edge_mask.T)
    return x * feat_mask, adj * edge_mask


def prune_encoder_weights(params, prune_rate):
    """Magnitude pruning on the UNPADDED weights (mirrors get_target_encoder)."""
    tensors = [params["w1"], params["b1"], params["w2"], params["b2"]]
    flat = jnp.concatenate([t.ravel() for t in tensors])
    n_w = int(flat.shape[0])
    k = int(np.ceil(prune_rate * n_w))
    k = min(k, n_w - 1)
    threshold = jnp.sort(jnp.abs(flat))[k]
    return {name: jnp.where(jnp.abs(params[name]) < threshold, 0.0, params[name])
            for name in ("w1", "b1", "w2", "b2")}


def prep_adj(adj, n_pad):
    """Self loops + D^-1/2; A kept un-normalized in int8 (exact 0/1)."""
    n = adj.shape[0]
    a_hat = adj + jnp.eye(n, dtype=adj.dtype)
    deg = jnp.sum(a_hat, axis=1)
    d_inv_sqrt = jnp.where(deg > 0, jax.lax.rsqrt(jnp.maximum(deg, 1e-12)), 0.0)
    a_pad = _pad2(a_hat, n_pad, n_pad).astype(jnp.int8)
    d_pad = jnp.pad(d_inv_sqrt, (0, n_pad - n)).reshape(n_pad, 1).astype(jnp.float32)
    return a_pad, d_pad, d_pad * d_pad


def pad_encoder_params(p, in_p, hid_p, out_p):
    return {
        "w1": _pad2(p["w1"], in_p, hid_p).astype(jnp.bfloat16),
        "b1": _pad2(p["b1"], 1, hid_p),
        "w2": _pad2(p["w2"], hid_p, out_p).astype(jnp.bfloat16),
        "b2": _pad2(p["b2"], 1, out_p),
    }


def _gcn_layer(s_bf16, a_i8, d, d2, w_bf16, bias, *, hops, act, out_dtype):
    """One GCN layer: (A_norm)^hops @ (X @ W) + bias, activation."""
    assert hops >= 1
    s = dense_scaled(s_bf16, w_bf16, d)                 # S0 = d * (X @ W), bf16
    for t in range(hops):
        last = (t == hops - 1)
        s = prop_hop(a_i8, d if last else d2, s, bias,
                     apply_bias_act=last, act=act,
                     out_dtype=out_dtype if last else jnp.bfloat16)
    return s


def encoder_forward_padded(x_bf16, a_i8, d, d2, pp, k):
    h1 = _gcn_layer(x_bf16, a_i8, d, d2, pp["w1"], pp["b1"],
                    hops=k, act="relu", out_dtype=jnp.bfloat16)
    h2 = _gcn_layer(h1, a_i8, d, d2, pp["w2"], pp["b2"],
                    hops=k, act=None, out_dtype=jnp.float32)
    return h2


# ----------------------------------------------------------------------------
# MGCLPruneAug forward
# ----------------------------------------------------------------------------
def mgcl_prune_aug_forward(params, x, adj, *, online_k=2, target_k=2,
                           stop_grad=1, use_pred=1, sym_loss=0,
                           prune_rate=0.3, aug_key=None):
    if aug_key is None:
        aug_key = jax.random.PRNGKey(1)
    n, in_dim = x.shape
    hid = params["w1"].shape[1]
    out_dim = params["w2"].shape[1]
    pred_dim = params["pw1"].shape[1]

    n_pad = _round_up(n, LANE)
    in_p = _round_up(in_dim, LANE)
    hid_p = _round_up(hid, LANE)
    out_p = _round_up(out_dim, LANE)
    pred_p = _round_up(pred_dim, LANE)

    k1, k2 = jax.random.split(aug_key)
    x1, adj1 = augment(k1, x, adj)
    x2, adj2 = augment(k2, x, adj)

    a1, d1, d1sq = prep_adj(adj1, n_pad)
    a2, d2, d2sq = prep_adj(adj2, n_pad)
    x1p = _pad2(x1, n_pad, in_p).astype(jnp.bfloat16)
    x2p = _pad2(x2, n_pad, in_p).astype(jnp.bfloat16)

    enc_online = pad_encoder_params(params, in_p, hid_p, out_p)
    enc_target = pad_encoder_params(prune_encoder_weights(params, prune_rate),
                                    in_p, hid_p, out_p)

    h1p = encoder_forward_padded(x1p, a1, d1, d1sq, enc_online, online_k)
    h2p = encoder_forward_padded(x2p, a2, d2, d2sq, enc_target, target_k)
    if stop_grad:
        h2p = jax.lax.stop_gradient(h2p)

    h1 = h1p[:n, :out_dim]
    h2 = h2p[:n, :out_dim]

    if use_pred:
        pw1 = _pad2(params["pw1"], out_p, pred_p).astype(jnp.bfloat16)
        pb1 = _pad2(params["pb1"], 1, pred_p)
        pw2 = _pad2(params["pw2"], pred_p, out_p).astype(jnp.bfloat16)
        pb2 = _pad2(params["pb2"], 1, out_p)
        h1_pred = predictor(h1p, pw1, pb1, pw2, pb2)[:n, :out_dim]
        if sym_loss:
            h2_pred = predictor(h2p, pw1, pb1, pw2, pb2)[:n, :out_dim]
            return h1, h2, h1_pred, h2_pred
        return h1, h2, h1_pred
    return h1, h2


# ----------------------------------------------------------------------------
# Pure-JAX reference (f32) for a correctness sanity check
# ----------------------------------------------------------------------------
def _reference_forward(params, x, adj, *, online_k, target_k, prune_rate, aug_key):
    k1, k2 = jax.random.split(aug_key)
    x1, adj1 = augment(k1, x, adj)
    x2, adj2 = augment(k2, x, adj)

    def norm(a):
        n = a.shape[0]
        ah = a + jnp.eye(n, dtype=a.dtype)
        deg = ah.sum(1)
        dis = jnp.where(deg > 0, 1.0 / jnp.sqrt(deg), 0.0)
        return ah * dis[:, None] * dis[None, :]

    def enc(xx, an, w1, b1, w2, b2, k):
        h = xx @ w1
        for _ in range(k):
            h = an @ h
        h = jnp.maximum(h + b1, 0.0)
        h = h @ w2
        for _ in range(k):
            h = an @ h
        return h + b2

    h1 = enc(x1, norm(adj1), params["w1"], params["b1"],
             params["w2"], params["b2"], online_k)
    pw = prune_encoder_weights(params, prune_rate)
    h2 = enc(x2, norm(adj2), pw["w1"], pw["b1"], pw["w2"], pw["b2"], target_k)

    z = h1 @ params["pw1"] + params["pb1"]
    z = jnp.where(z > 0.0, z, jnp.exp(jnp.minimum(z, 0.0)) - 1.0)
    h1_pred = z @ params["pw2"] + params["pb2"]
    return h1, h2, h1_pred


# ----------------------------------------------------------------------------
if __name__ == "__main__":
    N, IN_DIM, HIDDEN, OUT_DIM, PRED_DIM = 128, 32, 64, 32, 16

    key = jax.random.PRNGKey(0)
    k_x, k_adj, k_params = jax.random.split(key, 3)

    x = jax.random.normal(k_x, (N, IN_DIM), jnp.float32)
    a_rand = jax.random.uniform(k_adj, (N, N))
    adj = (a_rand < 0.1).astype(jnp.float32)
    adj = jnp.maximum(adj, adj.T)
    adj = adj * (1.0 - jnp.eye(N, dtype=jnp.float32))

    params = init_params(k_params, IN_DIM, HIDDEN, OUT_DIM, PRED_DIM)
    aug_key = jax.random.PRNGKey(1)

    @jax.jit
    def run(params, x, adj, aug_key):
        return mgcl_prune_aug_forward(params, x, adj, online_k=2, target_k=2,
                                      stop_grad=1, use_pred=1, sym_loss=0,
                                      prune_rate=0.3, aug_key=aug_key)

    h1, h2, h1_pred = run(params, x, adj, aug_key)
    jax.block_until_ready((h1, h2, h1_pred))

    assert h1.shape == (N, OUT_DIM)
    assert h2.shape == (N, OUT_DIM)
    assert h1_pred.shape == (N, OUT_DIM)

    # correctness sanity check vs pure-JAX f32 reference (bf16 MXU -> loose tol)
    h1_r, h2_r, h1p_r = _reference_forward(params, x, adj, online_k=2,
                                           target_k=2, prune_rate=0.3,
                                           aug_key=aug_key)

    def _check(a, b, name):
        err = float(jnp.max(jnp.abs(a - b)))
        scale = float(jnp.max(jnp.abs(b))) + 1e-6
        assert err <= 0.05 * scale + 0.05, f"{name}: err={err} scale={scale}"

    _check(h1, h1_r, "h1")
    _check(h2, h2_r, "h2")
    _check(h1_pred, h1p_r, "h1_pred")

    print("KERNEL_OK")
</pallas_src>

<mosaic_0001>
module attributes {stable_mosaic.version = 11 : i64} {
  func.func @_dense_scaled_kernel(%arg0: i32, %arg1: i32, %arg2: memref<128x128xbf16, #tpu.memory_space<vmem>>, %arg3: memref<128x128xbf16, #tpu.memory_space<vmem>>, %arg4: memref<128x1xf32, #tpu.memory_space<vmem>>, %arg5: memref<128x128xbf16, #tpu.memory_space<vmem>>, %arg6: memref<128x128xf32, #tpu.memory_space<vmem>>) attributes {dimension_semantics = [#tpu.dimension_semantics<parallel>, #tpu.dimension_semantics<arbitrary>], iteration_bounds = array<i64: 1, 1>, scalar_prefetch = 0 : i64, scratch_operands = 1 : i64, tpu.core_type = #tpu.core_type<tc>, window_params = [{transform_indices = @transform_0, window_bounds = array<i64: 128, 128>}, {transform_indices = @transform_1, window_bounds = array<i64: 128, 128>}, {transform_indices = @transform_2, window_bounds = array<i64: 128, 1>}, {transform_indices = @transform_3, window_bounds = array<i64: 128, 128>}]} {
    %c0_i32 = arith.constant 0 : i32
    %0 = arith.cmpi eq, %arg1, %c0_i32 : i32
    %1 = arith.extui %0 : i1 to i32
    %c0_i32_0 = arith.constant 0 : i32
    %2 = arith.cmpi ne, %1, %c0_i32_0 : i32
    scf.if %2 {
      %cst_10 = arith.constant 0.000000e+00 : f32
      %12 = vector.broadcast %cst_10 : f32 to vector<128x128xf32>
      %c0_11 = arith.constant 0 : index
      %c0_12 = arith.constant 0 : index
      %13 = vector.load %arg6[%c0_11, %c0_12] : memref<128x128xf32, #tpu.memory_space<vmem>>, vector<128x128xf32>
      tpu.vector_store %arg6[%c0_11, %c0_12], %12 {strides = array<i32>} : memref<128x128xf32, #tpu.memory_space<vmem>>, vector<128x128xf32>,
    } else {
    }
    %c0 = arith.constant 0 : index
    %c0_1 = arith.constant 0 : index
    %3 = vector.load %arg6[%c0, %c0_1] : memref<128x128xf32, #tpu.memory_space<vmem>>, vector<128x128xf32>
    %c0_2 = arith.constant 0 : index
    %c0_3 = arith.constant 0 : index
    %4 = vector.load %arg2[%c0_2, %c0_3] : memref<128x128xbf16, #tpu.memory_space<vmem>>, vector<128x128xbf16>
    %c0_4 = arith.constant 0 : index
    %c0_5 = arith.constant 0 : index
    %5 = vector.load %arg3[%c0_4, %c0_5] : memref<128x128xbf16, #tpu.memory_space<vmem>>, vector<128x128xbf16>
    %cst = arith.constant dense<0.000000e+00> : vector<128x128xf32>
    %6 = tpu.matmul %4, %5, %cst {dimension_numbers = #tpu.dot_dimension_numbers<[1], [0], [0], [1], [0, 0, 1, 1], [], []>} : vector<128x128xbf16>, vector<128x128xbf16>, vector<128x128xf32> -> vector<128x128xf32>
    %7 = arith.addf %3, %6 : vector<128x128xf32>
    %c0_6 = arith.constant 0 : index
    %c0_7 = arith.constant 0 : index
    %8 = vector.load %arg6[%c0_6, %c0_7] : memref<128x128xf32, #tpu.memory_space<vmem>>, vector<128x128xf32>
    tpu.vector_store %arg6[%c0_6, %c0_7], %7 {strides = array<i32>} : memref<128x128xf32, #tpu.memory_space<vmem>>, vector<128x128xf32>,
    %c0_i32_8 = arith.constant 0 : i32
    %9 = arith.cmpi eq, %arg1, %c0_i32_8 : i32
    %10 = arith.extui %9 : i1 to i32
    %c0_i32_9 = arith.constant 0 : i32
    %11 = arith.cmpi ne, %10, %c0_i32_9 : i32
    scf.if %11 {
      %c0_10 = arith.constant 0 : index
      %c0_11 = arith.constant 0 : index
      %12 = vector.load %arg6[%c0_10, %c0_11] : memref<128x128xf32, #tpu.memory_space<vmem>>, vector<128x128xf32>
      %c0_12 = arith.constant 0 : index
      %c0_13 = arith.constant 0 : index
      %13 = vector.load %arg4[%c0_12, %c0_13] : memref<128x1xf32, #tpu.memory_space<vmem>>, vector<128x1xf32>
      %14 = vector.broadcast %13 : vector<128x1xf32> to vector<128x128xf32>
      %15 = arith.mulf %12, %14 : vector<128x128xf32>
      %16 = arith.truncf %15 : vector<128x128xf32> to vector<128x128xbf16>
      %c0_14 = arith.constant 0 : index
      %c0_15 = arith.constant 0 : index
      %17 = vector.load %arg5[%c0_14, %c0_15] : memref<128x128xbf16, #tpu.memory_space<vmem>>, vector<128x128xbf16>
      tpu.vector_store %arg5[%c0_14, %c0_15], %16 {strides = array<i32>} : memref<128x128xbf16, #tpu.memory_space<vmem>>, vector<128x128xbf16>,
    } else {
    }
    return
  }
  func.func @transform_0(%arg0: i32, %arg1: i32) -> (i32, i32) {
    %c0_i32 = arith.constant 0 : i32
    return %arg0, %arg1 : i32, i32
  }
  func.func @transform_1(%arg0: i32, %arg1: i32) -> (i32, i32) {
    %c0_i32 = arith.constant 0 : i32
    %c0_i32_0 = arith.constant 0 : i32
    return %arg1, %c0_i32 : i32, i32
  }
  func.func @transform_2(%arg0: i32, %arg1: i32) -> (i32, i32) {
    %c0_i32 = arith.constant 0 : i32
    %c0_i32_0 = arith.constant 0 : i32
    return %arg0, %c0_i32 : i32, i32
  }
  func.func @transform_3(%arg0: i32, %arg1: i32) -> (i32, i32) {
    %c0_i32 = arith.constant 0 : i32
    %c0_i32_0 = arith.constant 0 : i32
    return %arg0, %c0_i32 : i32, i32
  }
}

module attributes {stable_mosaic.version = 11 : i64} {
  func.func @_prop_hop_kernel(%arg0: i32, %arg1: i32, %arg2: memref<128x128xi8, #tpu.memory_space<vmem>>, %arg3: memref<128x128xbf16, #tpu.memory_space<vmem>>, %arg4: memref<128x1xf32, #tpu.memory_space<vmem>>, %arg5: memref<1x128xf32, #tpu.memory_space<vmem>>, %arg6: memref<128x128xbf16, #tpu.memory_space<vmem>>, %arg7: memref<128x128xf32, #tpu.memory_space<vmem>>) attributes {dimension_semantics = [#tpu.dimension_semantics<parallel>, #tpu.dimension_semantics<arbitrary>], iteration_bounds = array<i64: 1, 1>, scalar_prefetch = 0 : i64, scratch_operands = 1 : i64, tpu.core_type = #tpu.core_type<tc>, window_params = [{transform_indices = @transform_0, window_bounds = array<i64: 128, 128>}, {pipeline_mode = #tpu.pipeline_mode<synchronous>, transform_indices = @transform_1, window_bounds = array<i64: 128, 128>}, {transform_indices = @transform_2, window_bounds = array<i64: 128, 1>}, {pipeline_mode = #tpu.pipeline_mode<synchronous>, transform_indices = @transform_3, window_bounds = array<i64: 1, 128>}, {transform_indices = @transform_4, window_bounds = array<i64: 128, 128>}]} {
    %c0_i32 = arith.constant 0 : i32
    %0 = arith.cmpi eq, %arg1, %c0_i32 : i32
    %1 = arith.extui %0 : i1 to i32
    %c0_i32_0 = arith.constant 0 : i32
    %2 = arith.cmpi ne, %1, %c0_i32_0 : i32
    scf.if %2 {
      %cst_9 = arith.constant 0.000000e+00 : f32
      %16 = vector.broadcast %cst_9 : f32 to vector<128x128xf32>
      %c0_10 = arith.constant 0 : index
      %c0_11 = arith.constant 0 : index
      %17 = vector.load %arg7[%c0_10, %c0_11] : memref<128x128xf32, #tpu.memory_space<vmem>>, vector<128x128xf32>
      tpu.vector_store %arg7[%c0_10, %c0_11], %16 {strides = array<i32>} : memref<128x128xf32, #tpu.memory_space<vmem>>, vector<128x128xf32>,
    } else {
    }
    %c0 = arith.constant 0 : index
    %c0_1 = arith.constant 0 : index
    %3 = vector.load %arg2[%c0, %c0_1] : memref<128x128xi8, #tpu.memory_space<vmem>>, vector<128x128xi8>
    %4 = arith.sitofp %3 : vector<128x128xi8> to vector<128x128xbf16>
    %c128_i32 = arith.constant 128 : i32
    %5 = arith.muli %arg1, %c128_i32 : i32
    %6 = tpu.assume_multiple %5, 128 : i32
    %7 = arith.index_cast %6 : i32 to index
    %c0_2 = arith.constant 0 : index
    %8 = vector.load %arg3[%7, %c0_2] : memref<128x128xbf16, #tpu.memory_space<vmem>>, vector<128x128xbf16>
    %c0_3 = arith.constant 0 : index
    %c0_4 = arith.constant 0 : index
    %9 = vector.load %arg7[%c0_3, %c0_4] : memref<128x128xf32, #tpu.memory_space<vmem>>, vector<128x128xf32>
    %cst = arith.constant dense<0.000000e+00> : vector<128x128xf32>
    %10 = tpu.matmul %4, %8, %cst {dimension_numbers = #tpu.dot_dimension_numbers<[1], [0], [0], [1], [0, 0, 1, 1], [], []>} : vector<128x128xbf16>, vector<128x128xbf16>, vector<128x128xf32> -> vector<128x128xf32>
    %11 = arith.addf %9, %10 : vector<128x128xf32>
    %c0_5 = arith.constant 0 : index
    %c0_6 = arith.constant 0 : index
    %12 = vector.load %arg7[%c0_5, %c0_6] : memref<128x128xf32, #tpu.memory_space<vmem>>, vector<128x128xf32>
    tpu.vector_store %arg7[%c0_5, %c0_6], %11 {strides = array<i32>} : memref<128x128xf32, #tpu.memory_space<vmem>>, vector<128x128xf32>,
    %c0_i32_7 = arith.constant 0 : i32
    %13 = arith.cmpi eq, %arg1, %c0_i32_7 : i32
    %14 = arith.extui %13 : i1 to i32
    %c0_i32_8 = arith.constant 0 : i32
    %15 = arith.cmpi ne, %14, %c0_i32_8 : i32
    scf.if %15 {
      %c0_9 = arith.constant 0 : index
      %c0_10 = arith.constant 0 : index
      %16 = vector.load %arg7[%c0_9, %c0_10] : memref<128x128xf32, #tpu.memory_space<vmem>>, vector<128x128xf32>
      %c0_11 = arith.constant 0 : index
      %c0_12 = arith.constant 0 : index
      %17 = vector.load %arg4[%c0_11, %c0_12] : memref<128x1xf32, #tpu.memory_space<vmem>>, vector<128x1xf32>
      %18 = vector.broadcast %17 : vector<128x1xf32> to vector<128x128xf32>
      %19 = arith.mulf %16, %18 : vector<128x128xf32>
      %20 = arith.truncf %19 : vector<128x128xf32> to vector<128x128xbf16>
      %c0_13 = arith.constant 0 : index
      %c0_14 = arith.constant 0 : index
      %21 = vector.load %arg6[%c0_13, %c0_14] : memref<128x128xbf16, #tpu.memory_space<vmem>>, vector<128x128xbf16>
      tpu.vector_store %arg6[%c0_13, %c0_14], %20 {strides = array<i32>} : memref<128x128xbf16, #tpu.memory_space<vmem>>, vector<128x128xbf16>,
    } else {
    }
    return
  }
  func.func @transform_0(%arg0: i32, %arg1: i32) -> (i32, i32) {
    %c0_i32 = arith.constant 0 : i32
    return %arg0, %arg1 : i32, i32
  }
  func.func @transform_1(%arg0: i32, %arg1: i32) -> (i32, i32) {
    %c0_i32 = arith.constant 0 : i32
    %c0_i32_0 = arith.constant 0 : i32
    %c0_i32_1 = arith.constant 0 : i32
    return %c0_i32, %c0_i32_0 : i32, i32
  }
  func.func @transform_2(%arg0: i32, %arg1: i32) -> (i32, i32) {
    %c0_i32 = arith.constant 0 : i32
    %c0_i32_0 = arith.constant 0 : i32
    return %arg0, %c0_i32 : i32, i32
  }
  func.func @transform_3(%arg0: i32, %arg1: i32) -> (i32, i32) {
    %c0_i32 = arith.constant 0 : i32
    %c0_i32_0 = arith.constant 0 : i32
    %c0_i32_1 = arith.constant 0 : i32
    return %c0_i32, %c0_i32_0 : i32, i32
  }
  func.func @transform_4(%arg0: i32, %arg1: i32) -> (i32, i32) {
    %c0_i32 = arith.constant 0 : i32
    %c0_i32_0 = arith.constant 0 : i32
    return %arg0, %c0_i32 : i32, i32
  }
}

module attributes {stable_mosaic.version = 11 : i64} {
  func.func @_prop_hop_kernel(%arg0: i32, %arg1: i32, %arg2: memref<128x128xi8, #tpu.memory_space<vmem>>, %arg3: memref<128x128xbf16, #tpu.memory_space<vmem>>, %arg4: memref<128x1xf32, #tpu.memory_space<vmem>>, %arg5: memref<1x128xf32, #tpu.memory_space<vmem>>, %arg6: memref<128x128xbf16, #tpu.memory_space<vmem>>, %arg7: memref<128x128xf32, #tpu.memory_space<vmem>>) attributes {dimension_semantics = [#tpu.dimension_semantics<parallel>, #tpu.dimension_semantics<arbitrary>], iteration_bounds = array<i64: 1, 1>, scalar_prefetch = 0 : i64, scratch_operands = 1 : i64, tpu.core_type = #tpu.core_type<tc>, window_params = [{transform_indices = @transform_0, window_bounds = array<i64: 128, 128>}, {pipeline_mode = #tpu.pipeline_mode<synchronous>, transform_indices = @transform_1, window_bounds = array<i64: 128, 128>}, {transform_indices = @transform_2, window_bounds = array<i64: 128, 1>}, {pipeline_mode = #tpu.pipeline_mode<synchronous>, transform_indices = @transform_3, window_bounds = array<i64: 1, 128>}, {transform_indices = @transform_4, window_bounds = array<i64: 128, 128>}]} {
    %c0_i32 = arith.constant 0 : i32
    %0 = arith.cmpi eq, %arg1, %c0_i32 : i32
    %1 = arith.extui %0 : i1 to i32
    %c0_i32_0 = arith.constant 0 : i32
    %2 = arith.cmpi ne, %1, %c0_i32_0 : i32
    scf.if %2 {
      %cst_9 = arith.constant 0.000000e+00 : f32
      %16 = vector.broadcast %cst_9 : f32 to vector<128x128xf32>
      %c0_10 = arith.constant 0 : index
      %c0_11 = arith.constant 0 : index
      %17 = vector.load %arg7[%c0_10, %c0_11] : memref<128x128xf32, #tpu.memory_space<vmem>>, vector<128x128xf32>
      tpu.vector_store %arg7[%c0_10, %c0_11], %16 {strides = array<i32>} : memref<128x128xf32, #tpu.memory_space<vmem>>, vector<128x128xf32>,
    } else {
    }
    %c0 = arith.constant 0 : index
    %c0_1 = arith.constant 0 : index
    %3 = vector.load %arg2[%c0, %c0_1] : memref<128x128xi8, #tpu.memory_space<vmem>>, vector<128x128xi8>
    %4 = arith.sitofp %3 : vector<128x128xi8> to vector<128x128xbf16>
    %c128_i32 = arith.constant 128 : i32
    %5 = arith.muli %arg1, %c128_i32 : i32
    %6 = tpu.assume_multiple %5, 128 : i32
    %7 = arith.index_cast %6 : i32 to index
    %c0_2 = arith.constant 0 : index
    %8 = vector.load %arg3[%7, %c0_2] : memref<128x128xbf16, #tpu.memory_space<vmem>>, vector<128x128xbf16>
    %c0_3 = arith.constant 0 : index
    %c0_4 = arith.constant 0 : index
    %9 = vector.load %arg7[%c0_3, %c0_4] : memref<128x128xf32, #tpu.memory_space<vmem>>, vector<128x128xf32>
    %cst = arith.constant dense<0.000000e+00> : vector<128x128xf32>
    %10 = tpu.matmul %4, %8, %cst {dimension_numbers = #tpu.dot_dimension_numbers<[1], [0], [0], [1], [0, 0, 1, 1], [], []>} : vector<128x128xbf16>, vector<128x128xbf16>, vector<128x128xf32> -> vector<128x128xf32>
    %11 = arith.addf %9, %10 : vector<128x128xf32>
    %c0_5 = arith.constant 0 : index
    %c0_6 = arith.constant 0 : index
    %12 = vector.load %arg7[%c0_5, %c0_6] : memref<128x128xf32, #tpu.memory_space<vmem>>, vector<128x128xf32>
    tpu.vector_store %arg7[%c0_5, %c0_6], %11 {strides = array<i32>} : memref<128x128xf32, #tpu.memory_space<vmem>>, vector<128x128xf32>,
    %c0_i32_7 = arith.constant 0 : i32
    %13 = arith.cmpi eq, %arg1, %c0_i32_7 : i32
    %14 = arith.extui %13 : i1 to i32
    %c0_i32_8 = arith.constant 0 : i32
    %15 = arith.cmpi ne, %14, %c0_i32_8 : i32
    scf.if %15 {
      %c0_9 = arith.constant 0 : index
      %c0_10 = arith.constant 0 : index
      %16 = vector.load %arg7[%c0_9, %c0_10] : memref<128x128xf32, #tpu.memory_space<vmem>>, vector<128x128xf32>
      %c0_11 = arith.constant 0 : index
      %c0_12 = arith.constant 0 : index
      %17 = vector.load %arg4[%c0_11, %c0_12] : memref<128x1xf32, #tpu.memory_space<vmem>>, vector<128x1xf32>
      %18 = vector.broadcast %17 : vector<128x1xf32> to vector<128x128xf32>
      %19 = arith.mulf %16, %18 : vector<128x128xf32>
      %c0_13 = arith.constant 0 : index
      %c0_14 = arith.constant 0 : index
      %20 = vector.load %arg5[%c0_13, %c0_14] : memref<1x128xf32, #tpu.memory_space<vmem>>, vector<1x128xf32>
      %21 = vector.broadcast %20 : vector<1x128xf32> to vector<128x128xf32>
      %22 = arith.addf %19, %21 : vector<128x128xf32>
      %cst_15 = arith.constant 0.000000e+00 : f32
      %23 = vector.broadcast %cst_15 : f32 to vector<128x128xf32>
      %24 = arith.maximumf %22, %23 : vector<128x128xf32>
      %25 = arith.truncf %24 : vector<128x128xf32> to vector<128x128xbf16>
      %c0_16 = arith.constant 0 : index
      %c0_17 = arith.constant 0 : index
      %26 = vector.load %arg6[%c0_16, %c0_17] : memref<128x128xbf16, #tpu.memory_space<vmem>>, vector<128x128xbf16>
      tpu.vector_store %arg6[%c0_16, %c0_17], %25 {strides = array<i32>} : memref<128x128xbf16, #tpu.memory_space<vmem>>, vector<128x128xbf16>,
    } else {
    }
    return
  }
  func.func @transform_0(%arg0: i32, %arg1: i32) -> (i32, i32) {
    %c0_i32 = arith.constant 0 : i32
    return %arg0, %arg1 : i32, i32
  }
  func.func @transform_1(%arg0: i32, %arg1: i32) -> (i32, i32) {
    %c0_i32 = arith.constant 0 : i32
    %c0_i32_0 = arith.constant 0 : i32
    %c0_i32_1 = arith.constant 0 : i32
    return %c0_i32, %c0_i32_0 : i32, i32
  }
  func.func @transform_2(%arg0: i32, %arg1: i32) -> (i32, i32) {
    %c0_i32 = arith.constant 0 : i32
    %c0_i32_0 = arith.constant 0 : i32
    return %arg0, %c0_i32 : i32, i32
  }
  func.func @transform_3(%arg0: i32, %arg1: i32) -> (i32, i32) {
    %c0_i32 = arith.constant 0 : i32
    %c0_i32_0 = arith.constant 0 : i32
    %c0_i32_1 = arith.constant 0 : i32
    return %c0_i32, %c0_i32_0 : i32, i32
  }
  func.func @transform_4(%arg0: i32, %arg1: i32) -> (i32, i32) {
    %c0_i32 = arith.constant 0 : i32
    %c0_i32_0 = arith.constant 0 : i32
    return %arg0, %c0_i32 : i32, i32
  }
}

module attributes {stable_mosaic.version = 11 : i64} {
  func.func @_prop_hop_kernel(%arg0: i32, %arg1: i32, %arg2: memref<128x128xi8, #tpu.memory_space<vmem>>, %arg3: memref<128x128xbf16, #tpu.memory_space<vmem>>, %arg4: memref<128x1xf32, #tpu.memory_space<vmem>>, %arg5: memref<1x128xf32, #tpu.memory_space<vmem>>, %arg6: memref<128x128xf32, #tpu.memory_space<vmem>>, %arg7: memref<128x128xf32, #tpu.memory_space<vmem>>) attributes {dimension_semantics = [#tpu.dimension_semantics<parallel>, #tpu.dimension_semantics<arbitrary>], iteration_bounds = array<i64: 1, 1>, scalar_prefetch = 0 : i64, scratch_operands = 1 : i64, tpu.core_type = #tpu.core_type<tc>, window_params = [{transform_indices = @transform_0, window_bounds = array<i64: 128, 128>}, {pipeline_mode = #tpu.pipeline_mode<synchronous>, transform_indices = @transform_1, window_bounds = array<i64: 128, 128>}, {transform_indices = @transform_2, window_bounds = array<i64: 128, 1>}, {pipeline_mode = #tpu.pipeline_mode<synchronous>, transform_indices = @transform_3, window_bounds = array<i64: 1, 128>}, {transform_indices = @transform_4, window_bounds = array<i64: 128, 128>}]} {
    %c0_i32 = arith.constant 0 : i32
    %0 = arith.cmpi eq, %arg1, %c0_i32 : i32
    %1 = arith.extui %0 : i1 to i32
    %c0_i32_0 = arith.constant 0 : i32
    %2 = arith.cmpi ne, %1, %c0_i32_0 : i32
    scf.if %2 {
      %cst_9 = arith.constant 0.000000e+00 : f32
      %16 = vector.broadcast %cst_9 : f32 to vector<128x128xf32>
      %c0_10 = arith.constant 0 : index
      %c0_11 = arith.constant 0 : index
      %17 = vector.load %arg7[%c0_10, %c0_11] : memref<128x128xf32, #tpu.memory_space<vmem>>, vector<128x128xf32>
      tpu.vector_store %arg7[%c0_10, %c0_11], %16 {strides = array<i32>} : memref<128x128xf32, #tpu.memory_space<vmem>>, vector<128x128xf32>,
    } else {
    }
    %c0 = arith.constant 0 : index
    %c0_1 = arith.constant 0 : index
    %3 = vector.load %arg2[%c0, %c0_1] : memref<128x128xi8, #tpu.memory_space<vmem>>, vector<128x128xi8>
    %4 = arith.sitofp %3 : vector<128x128xi8> to vector<128x128xbf16>
    %c128_i32 = arith.constant 128 : i32
    %5 = arith.muli %arg1, %c128_i32 : i32
    %6 = tpu.assume_multiple %5, 128 : i32
    %7 = arith.index_cast %6 : i32 to index
    %c0_2 = arith.constant 0 : index
    %8 = vector.load %arg3[%7, %c0_2] : memref<128x128xbf16, #tpu.memory_space<vmem>>, vector<128x128xbf16>
    %c0_3 = arith.constant 0 : index
    %c0_4 = arith.constant 0 : index
    %9 = vector.load %arg7[%c0_3, %c0_4] : memref<128x128xf32, #tpu.memory_space<vmem>>, vector<128x128xf32>
    %cst = arith.constant dense<0.000000e+00> : vector<128x128xf32>
    %10 = tpu.matmul %4, %8, %cst {dimension_numbers = #tpu.dot_dimension_numbers<[1], [0], [0], [1], [0, 0, 1, 1], [], []>} : vector<128x128xbf16>, vector<128x128xbf16>, vector<128x128xf32> -> vector<128x128xf32>
    %11 = arith.addf %9, %10 : vector<128x128xf32>
    %c0_5 = arith.constant 0 : index
    %c0_6 = arith.constant 0 : index
    %12 = vector.load %arg7[%c0_5, %c0_6] : memref<128x128xf32, #tpu.memory_space<vmem>>, vector<128x128xf32>
    tpu.vector_store %arg7[%c0_5, %c0_6], %11 {strides = array<i32>} : memref<128x128xf32, #tpu.memory_space<vmem>>, vector<128x128xf32>,
    %c0_i32_7 = arith.constant 0 : i32
    %13 = arith.cmpi eq, %arg1, %c0_i32_7 : i32
    %14 = arith.extui %13 : i1 to i32
    %c0_i32_8 = arith.constant 0 : i32
    %15 = arith.cmpi ne, %14, %c0_i32_8 : i32
    scf.if %15 {
      %c0_9 = arith.constant 0 : index
      %c0_10 = arith.constant 0 : index
      %16 = vector.load %arg7[%c0_9, %c0_10] : memref<128x128xf32, #tpu.memory_space<vmem>>, vector<128x128xf32>
      %c0_11 = arith.constant 0 : index
      %c0_12 = arith.constant 0 : index
      %17 = vector.load %arg4[%c0_11, %c0_12] : memref<128x1xf32, #tpu.memory_space<vmem>>, vector<128x1xf32>
      %18 = vector.broadcast %17 : vector<128x1xf32> to vector<128x128xf32>
      %19 = arith.mulf %16, %18 : vector<128x128xf32>
      %c0_13 = arith.constant 0 : index
      %c0_14 = arith.constant 0 : index
      %20 = vector.load %arg5[%c0_13, %c0_14] : memref<1x128xf32, #tpu.memory_space<vmem>>, vector<1x128xf32>
      %21 = vector.broadcast %20 : vector<1x128xf32> to vector<128x128xf32>
      %22 = arith.addf %19, %21 : vector<128x128xf32>
      %c0_15 = arith.constant 0 : index
      %c0_16 = arith.constant 0 : index
      %23 = vector.load %arg6[%c0_15, %c0_16] : memref<128x128xf32, #tpu.memory_space<vmem>>, vector<128x128xf32>
      tpu.vector_store %arg6[%c0_15, %c0_16], %22 {strides = array<i32>} : memref<128x128xf32, #tpu.memory_space<vmem>>, vector<128x128xf32>,
    } else {
    }
    return
  }
  func.func @transform_0(%arg0: i32, %arg1: i32) -> (i32, i32) {
    %c0_i32 = arith.constant 0 : i32
    return %arg0, %arg1 : i32, i32
  }
  func.func @transform_1(%arg0: i32, %arg1: i32) -> (i32, i32) {
    %c0_i32 = arith.constant 0 : i32
    %c0_i32_0 = arith.constant 0 : i32
    %c0_i32_1 = arith.constant 0 : i32
    return %c0_i32, %c0_i32_0 : i32, i32
  }
  func.func @transform_2(%arg0: i32, %arg1: i32) -> (i32, i32) {
    %c0_i32 = arith.constant 0 : i32
    %c0_i32_0 = arith.constant 0 : i32
    return %arg0, %c0_i32 : i32, i32
  }
  func.func @transform_3(%arg0: i32, %arg1: i32) -> (i32, i32) {
    %c0_i32 = arith.constant 0 : i32
    %c0_i32_0 = arith.constant 0 : i32
    %c0_i32_1 = arith.constant 0 : i32
    return %c0_i32, %c0_i32_0 : i32, i32
  }
  func.func @transform_4(%arg0: i32, %arg1: i32) -> (i32, i32) {
    %c0_i32 = arith.constant 0 : i32
    %c0_i32_0 = arith.constant 0 : i32
    return %arg0, %c0_i32 : i32, i32
  }
}

module attributes {stable_mosaic.version = 11 : i64} {
  func.func @_predictor_kernel(%arg0: i32, %arg1: memref<128x128xf32, #tpu.memory_space<vmem>>, %arg2: memref<128x128xbf16, #tpu.memory_space<vmem>>, %arg3: memref<1x128xf32, #tpu.memory_space<vmem>>, %arg4: memref<128x128xbf16, #tpu.memory_space<vmem>>, %arg5: memref<1x128xf32, #tpu.memory_space<vmem>>, %arg6: memref<128x128xf32, #tpu.memory_space<vmem>>) attributes {dimension_semantics = [#tpu.dimension_semantics<parallel>], iteration_bounds = array<i64: 1>, scalar_prefetch = 0 : i64, scratch_operands = 0 : i64, tpu.core_type = #tpu.core_type<tc>, window_params = [{transform_indices = @transform_0, window_bounds = array<i64: 128, 128>}, {pipeline_mode = #tpu.pipeline_mode<synchronous>, transform_indices = @transform_1, window_bounds = array<i64: 128, 128>}, {pipeline_mode = #tpu.pipeline_mode<synchronous>, transform_indices = @transform_2, window_bounds = array<i64: 1, 128>}, {pipeline_mode = #tpu.pipeline_mode<synchronous>, transform_indices = @transform_3, window_bounds = array<i64: 128, 128>}, {pipeline_mode = #tpu.pipeline_mode<synchronous>, transform_indices = @transform_4, window_bounds = array<i64: 1, 128>}, {transform_indices = @transform_5, window_bounds = array<i64: 128, 128>}]} {
    %c0 = arith.constant 0 : index
    %c0_0 = arith.constant 0 : index
    %0 = vector.load %arg1[%c0, %c0_0] : memref<128x128xf32, #tpu.memory_space<vmem>>, vector<128x128xf32>
    %1 = arith.truncf %0 : vector<128x128xf32> to vector<128x128xbf16>
    %c0_1 = arith.constant 0 : index
    %c0_2 = arith.constant 0 : index
    %2 = vector.load %arg2[%c0_1, %c0_2] : memref<128x128xbf16, #tpu.memory_space<vmem>>, vector<128x128xbf16>
    %cst = arith.constant dense<0.000000e+00> : vector<128x128xf32>
    %3 = tpu.matmul %1, %2, %cst {dimension_numbers = #tpu.dot_dimension_numbers<[1], [0], [0], [1], [0, 0, 1, 1], [], []>} : vector<128x128xbf16>, vector<128x128xbf16>, vector<128x128xf32> -> vector<128x128xf32>
    %c0_3 = arith.constant 0 : index
    %c0_4 = arith.constant 0 : index
    %4 = vector.load %arg3[%c0_3, %c0_4] : memref<1x128xf32, #tpu.memory_space<vmem>>, vector<1x128xf32>
    %5 = vector.broadcast %4 : vector<1x128xf32> to vector<128x128xf32>
    %6 = arith.addf %3, %5 : vector<128x128xf32>
    %cst_5 = arith.constant 0.000000e+00 : f32
    %7 = vector.broadcast %cst_5 : f32 to vector<128x128xf32>
    %8 = arith.cmpf ogt, %6, %7 : vector<128x128xf32>
    %cst_6 = arith.constant 0.000000e+00 : f32
    %9 = vector.broadcast %cst_6 : f32 to vector<128x128xf32>
    %10 = arith.minimumf %6, %9 : vector<128x128xf32>
    %11 = math.exp %10 : vector<128x128xf32>
    %cst_7 = arith.constant 1.000000e+00 : f32
    %12 = vector.broadcast %cst_7 : f32 to vector<128x128xf32>
    %13 = arith.subf %11, %12 : vector<128x128xf32>
    %14 = arith.select %8, %6, %13 : vector<128x128xi1>, vector<128x128xf32>
    %15 = arith.truncf %14 : vector<128x128xf32> to vector<128x128xbf16>
    %c0_8 = arith.constant 0 : index
    %c0_9 = arith.constant 0 : index
    %16 = vector.load %arg4[%c0_8, %c0_9] : memref<128x128xbf16, #tpu.memory_space<vmem>>, vector<128x128xbf16>
    %cst_10 = arith.constant dense<0.000000e+00> : vector<128x128xf32>
    %17 = tpu.matmul %15, %16, %cst_10 {dimension_numbers = #tpu.dot_dimension_numbers<[1], [0], [0], [1], [0, 0, 1, 1], [], []>} : vector<128x128xbf16>, vector<128x128xbf16>, vector<128x128xf32> -> vector<128x128xf32>
    %c0_11 = arith.constant 0 : index
    %c0_12 = arith.constant 0 : index
    %18 = vector.load %arg5[%c0_11, %c0_12] : memref<1x128xf32, #tpu.memory_space<vmem>>, vector<1x128xf32>
    %19 = vector.broadcast %18 : vector<1x128xf32> to vector<128x128xf32>
    %20 = arith.addf %17, %19 : vector<128x128xf32>
    %c0_13 = arith.constant 0 : index
    %c0_14 = arith.constant 0 : index
    %21 = vector.load %arg6[%c0_13, %c0_14] : memref<128x128xf32, #tpu.memory_space<vmem>>, vector<128x128xf32>
    tpu.vector_store %arg6[%c0_13, %c0_14], %20 {strides = array<i32>} : memref<128x128xf32, #tpu.memory_space<vmem>>, vector<128x128xf32>,
    return
  }
  func.func @transform_0(%arg0: i32) -> (i32, i32) {
    %c0_i32 = arith.constant 0 : i32
    %c0_i32_0 = arith.constant 0 : i32
    return %arg0, %c0_i32 : i32, i32
  }
  func.func @transform_1(%arg0: i32) -> (i32, i32) {
    %c0_i32 = arith.constant 0 : i32
    %c0_i32_0 = arith.constant 0 : i32
    %c0_i32_1 = arith.constant 0 : i32
    return %c0_i32, %c0_i32_0 : i32, i32
  }
  func.func @transform_2(%arg0: i32) -> (i32, i32) {
    %c0_i32 = arith.constant 0 : i32
    %c0_i32_0 = arith.constant 0 : i32
    %c0_i32_1 = arith.constant 0 : i32
    return %c0_i32, %c0_i32_0 : i32, i32
  }
  func.func @transform_3(%arg0: i32) -> (i32, i32) {
    %c0_i32 = arith.constant 0 : i32
    %c0_i32_0 = arith.constant 0 : i32
    %c0_i32_1 = arith.constant 0 : i32
    return %c0_i32, %c0_i32_0 : i32, i32
  }
  func.func @transform_4(%arg0: i32) -> (i32, i32) {
    %c0_i32 = arith.constant 0 : i32
    %c0_i32_0 = arith.constant 0 : i32
    %c0_i32_1 = arith.constant 0 : i32
    return %c0_i32, %c0_i32_0 : i32, i32
  }
  func.func @transform_5(%arg0: i32) -> (i32, i32) {
    %c0_i32 = arith.constant 0 : i32
    %c0_i32_0 = arith.constant 0 : i32
    return %arg0, %c0_i32 : i32, i32
  }
}

</mosaic_0001>

<bundles_post_ra>
// kernel: run.19
= control target key start
LH: loop header
LB: loop body
LE: loop exit
PB: predicated region body
PF: predicated region fallthrough
CT: control target
= control target key end

     0   :  { %v581_v0 = vmov 0   ;;  %s722_s2 = inlined_call_operand.vmem [shape: f32[128,1], index: 2, kind: input, shape index: {}]   ;;  %s723_s1 = inlined_call_operand.vmem [shape: bf16[128,128], index: 1, kind: input, shape index: {}]   ;;  %s724_s0 = inlined_call_operand.vmem [shape: bf16[128,128], index: 0, kind: input, shape index: {}]   ;;  %s725_s3 = inlined_call_operand.vmem [shape: bf16[128,128], index: 3, kind: output, shape index: {}]  }
   0x1   :  { %578 = vset.pattern.permute.xlu0 %v581_v0  ;;  %v278_v1 = vld [vmem:[%s722_s2] sm:$0xff]  ;;  %v505_v2 = vld [vmem:[%s723_s1 + $0x38] sm:$0xff]  ;;  %579 = vset.pattern.permute.xlu1 %v581_v0  ;;  %v280_v3 = vld [vmem:[%s722_s2 + $0x10] sm:$0xff] }
   0x2   :  { %296 = vperm.xlu0 %578, %v278_v1   ;;  %580 = vset.pattern.permute.xlu2 %v581_v0  ;;  %v504_v4 = vld [vmem:[%s723_s1 + $0x30] sm:$0xff]  ;;  %v279_v5 = vld [vmem:[%s722_s2 + $0x8] sm:$0xff]  ;;  %v282_v7 = vld [vmem:[%s722_s2 + $0x20] sm:$0xff] }
   0x3   :  { %178 = vmatpush.bf16.msra.mxu0 %v505_v2  ;;  %553 = vmatpush.bf16.msra.mxu1 %v505_v2  ;;  %v503_v6 = vld [vmem:[%s723_s1 + $0x28] sm:$0xff]  ;;  %v281_v8 = vld [vmem:[%s722_s2 + $0x18] sm:$0xff]  ;;  %v502_v9 = vld [vmem:[%s723_s1 + $0x20] sm:$0xff] }
   0x4   :  { %554 = vmatpush.bf16.msra.mxu2 %v505_v2  ;;  %555 = vmatpush.bf16.msra.mxu3 %v505_v2  ;;  %v283_v10 = vld [vmem:[%s722_s2 + $0x28] sm:$0xff]  ;;  %v284_v11 = vld [vmem:[%s722_s2 + $0x30] sm:$0xff]  ;;  %v501_v12 = vld [vmem:[%s723_s1 + $0x18] sm:$0xff] }
   0x5   :  { %306 = vperm.xlu1 %579, %v280_v3   ;;  %316 = vperm.xlu2 %580, %v282_v7   ;;  %v285_v13 = vld [vmem:[%s722_s2 + $0x38] sm:$0xff]  ;;  %v500_v14 = vld [vmem:[%s723_s1 + $0x10] sm:$0xff]  ;;  %v286_v15 = vld [vmem:[%s722_s2 + $0x40] sm:$0xff] }
   0x6   :  { %v287_v16 = vld [vmem:[%s722_s2 + $0x48] sm:$0xff]  ;;  %v288_v18 = vld [vmem:[%s722_s2 + $0x50] sm:$0xff]  ;;  %v498_v19 = vld [vmem:[%s723_s1] sm:$0xff] }
   0x7   :  { %179 = vmatpush.bf16.msra.mxu0 %v504_v4  ;;  %556 = vmatpush.bf16.msra.mxu1 %v504_v4  ;;  %v499_v17 = vld [vmem:[%s723_s1 + $0x8] sm:$0xff]  ;;  %v490_v20 = vld [vmem:[%s724_s0] sm:$0xff]  ;;  %v289_v21 = vld [vmem:[%s722_s2 + $0x58] sm:$0xff] }
   0x8   :  { %557 = vmatpush.bf16.msra.mxu2 %v504_v4  ;;  %558 = vmatpush.bf16.msra.mxu3 %v504_v4  ;;  %v290_v22 = vld [vmem:[%s722_s2 + $0x60] sm:$0xff]  ;;  %v492_v23 = vld [vmem:[%s724_s0 + $0x10] sm:$0xff]  ;;  %v291_v26 = vld [vmem:[%s722_s2 + $0x68] sm:$0xff] }
   0x9   :  { %v494_v24 = vld [vmem:[%s724_s0 + $0x20] sm:$0xff]  ;;  %v496_v25 = vld [vmem:[%s724_s0 + $0x30] sm:$0xff]  ;;  %v293_v28 = vld [vmem:[%s722_s2 + $0x78] sm:$0xff] }
   0xa   :  { %301 = vperm.xlu0 %578, %v279_v5   ;;  %v292_v27 = vld [vmem:[%s722_s2 + $0x70] sm:$0xff]  ;;  %v491_v29 = vld [vmem:[%s724_s0 + $0x8] sm:$0xff]  ;;  %v493_v30 = vld [vmem:[%s724_s0 + $0x18] sm:$0xff] }
   0xb   :  { %180 = vmatpush.bf16.msra.mxu0 %v503_v6  ;;  %559 = vmatpush.bf16.msra.mxu1 %v503_v6  ;;  %v495_v31 = vld [vmem:[%s724_s0 + $0x28] sm:$0xff]  ;;  %v497_v32 = vld [vmem:[%s724_s0 + $0x38] sm:$0xff] }
   0xc   :  { %560 = vmatpush.bf16.msra.mxu2 %v503_v6  ;;  %561 = vmatpush.bf16.msra.mxu3 %v503_v6 }
   0xd   :  { %311 = vperm.xlu1 %579, %v281_v8   ;;  %321 = vperm.xlu2 %580, %v283_v10  }
   0xf   :  { %181 = vmatpush.bf16.msra.mxu0 %v502_v9  ;;  %562 = vmatpush.bf16.msra.mxu1 %v502_v9 }
  0x10   :  { %563 = vmatpush.bf16.msra.mxu2 %v502_v9  ;;  %564 = vmatpush.bf16.msra.mxu3 %v502_v9 }
  0x12   :  { %326 = vperm.xlu0 %578, %v284_v11  }
  0x13   :  { %182 = vmatpush.bf16.msra.mxu0 %v501_v12  ;;  %565 = vmatpush.bf16.msra.mxu1 %v501_v12 }
  0x14   :  { %566 = vmatpush.bf16.msra.mxu2 %v501_v12  ;;  %567 = vmatpush.bf16.msra.mxu3 %v501_v12 }
  0x15   :  { %331 = vperm.xlu1 %579, %v285_v13   ;;  %336 = vperm.xlu2 %580, %v286_v15  }
  0x17   :  { %183 = vmatpush.bf16.msra.mxu0 %v500_v14  ;;  %568 = vmatpush.bf16.msra.mxu1 %v500_v14 }
  0x18   :  { %569 = vmatpush.bf16.msra.mxu2 %v500_v14  ;;  %570 = vmatpush.bf16.msra.mxu3 %v500_v14 }
  0x1a   :  { %341 = vperm.xlu0 %578, %v287_v16  }
  0x1b   :  { %184 = vmatpush.bf16.msra.mxu0 %v499_v17  ;;  %571 = vmatpush.bf16.msra.mxu1 %v499_v17 }
  0x1c   :  { %572 = vmatpush.bf16.msra.mxu2 %v499_v17  ;;  %573 = vmatpush.bf16.msra.mxu3 %v499_v17 }
  0x1d   :  { %346 = vperm.xlu1 %579, %v288_v18   ;;  %351 = vperm.xlu2 %580, %v289_v21  }
  0x1f   :  { %185 = vmatpush.bf16.msra.mxu0 %v498_v19  ;;  %574 = vmatpush.bf16.msra.mxu1 %v498_v19 }
  0x20   :  { %575 = vmatpush.bf16.msra.mxu2 %v498_v19  ;;  %576 = vmatpush.bf16.msra.mxu3 %v498_v19 }
  0x22   :  { %356 = vperm.xlu0 %578, %v290_v22   ;;  %186 = vmatmul.bf16.vlgmr.msra.gmra.mxu0 %v490_v20 }
  0x23   :  { %196 = vmatmul.bf16.vlgmr.msra.gmra.mxu1 %v492_v23  ;;  %206 = vmatmul.bf16.vlgmr.msra.gmra.mxu2 %v494_v24 }
  0x24   :  { %216 = vmatmul.bf16.vlgmr.msra.gmra.mxu3 %v496_v25 }
  0x25   :  { %361 = vperm.xlu1 %579, %v291_v26   ;;  %366 = vperm.xlu2 %580, %v292_v27  }
  0x2a   :  { %371 = vperm.xlu0 %578, %v293_v28  }
  0x32   :  { %191 = vmatmul.bf16.gmra.mxu0 %v491_v29 }
  0x33   :  { %201 = vmatmul.bf16.gmra.mxu1 %v493_v30  ;;  %211 = vmatmul.bf16.gmra.mxu2 %v495_v31 }
  0x34   :  { %221 = vmatmul.bf16.gmra.mxu3 %v497_v32 }
  0x5f   :  { %v317_v37 = vpop.permute.xlu2 %316 }
  0x67   :  { %v322_v41 = vpop.permute.xlu2 %321 }
  0x6f   :  { %v337_v53 = vpop.permute.xlu2 %336 }
  0x74   :  { %v297_v33 = vpop.permute.xlu0 %296 }
  0x77   :  { %v307_v34 = vpop.permute.xlu1 %306  ;;  %v352_v4 = vpop.permute.xlu2 %351 }
  0x7c   :  { %v302_v35 = vpop.permute.xlu0 %301 }
  0x7f   :  { %v312_v36 = vpop.permute.xlu1 %311  ;;  %v367_v15 = vpop.permute.xlu2 %366 }
  0x84   :  { %v327_v38 = vpop.permute.xlu0 %326 }
  0x87   :  { %v332_v39 = vpop.permute.xlu1 %331 }
  0x8c   :  { %v342_v43 = vpop.permute.xlu0 %341 }
  0x8f   :  { %v347_v44 = vpop.permute.xlu1 %346 }
  0x94   :  { %v357_v56 = vpop.permute.xlu0 %356 }
  0x97   :  { %v362_v57 = vpop.permute.xlu1 %361 }
  0x9c   :  { %v372_v17 = vpop.permute.xlu0 %371 }
  0x9f   :  { %v187_v40 = vpop.f32.mrf.mxu0 }
  0xa0   :  { %v197_v42 = vpop.f32.mrf.mxu1  ;;  %v374_v48 = vmul.f32 %v297_v33, %v187_v40 }
  0xa1   :  { %v378_v51 = vmul.f32 %v317_v37, %v197_v42 }
  0xa6   :  { %v207_v45 = vpop.f32.mrf.mxu2 }
  0xa7   :  { %v217_v46 = vpop.f32.mrf.mxu3  ;;  %v189_v47 = vpop.f32.mrf.mxu0  ;;  %v382_v59 = vmul.f32 %v337_v53, %v207_v45 }
  0xa8   :  { %v375_v49 = vmul.f32 %v302_v35, %v189_v47  ;;  %v199_v50 = vpop.f32.mrf.mxu1  ;;  %v386_v63 = vmul.f32 %v357_v56, %v217_v46 }
  0xa9   :  { %v379_v52 = vmul.f32 %v322_v41, %v199_v50 }
  0xaa   :  { %v509_v54 = vpack.c.bf16 %v375_v49, %v374_v48 }
  0xab   :  { %v519_v55 = vpack.c.bf16 %v379_v52, %v378_v51 }
  0xac   :  { %510 = vst [vmem:[%s725_s3] sm:$0xff] %v509_v54  }
  0xad   :  { %547 = vst [vmem:[%s725_s3 + $0x10] sm:$0xff] %v519_v55  }
  0xae   :  { %v209_v58 = vpop.f32.mrf.mxu2 }
  0xaf   :  { %v383_v60 = vmul.f32 %v342_v43, %v209_v58  ;;  %v219_v61 = vpop.f32.mrf.mxu3  ;;  %v192_v62 = vpop.f32.mrf.mxu0 }
  0xb0   :  { %v387_v0 = vmul.f32 %v362_v57, %v219_v61  ;;  %v202_v1 = vpop.f32.mrf.mxu1  ;;  %v376_v8 = vmul.f32 %v307_v34, %v192_v62 }
  0xb1   :  { %v529_v2 = vpack.c.bf16 %v383_v60, %v382_v59  ;;  %v380_v11 = vmul.f32 %v327_v38, %v202_v1 }
  0xb2   :  { %v539_v3 = vpack.c.bf16 %v387_v0, %v386_v63 }
  0xb3   :  { %549 = vst [vmem:[%s725_s3 + $0x20] sm:$0xff] %v529_v2  }
  0xb4   :  { %551 = vst [vmem:[%s725_s3 + $0x30] sm:$0xff] %v539_v3  }
  0xb6   :  { %v212_v5 = vpop.f32.mrf.mxu2 }
  0xb7   :  { %v222_v6 = vpop.f32.mrf.mxu3  ;;  %v194_v7 = vpop.f32.mrf.mxu0  ;;  %v384_v18 = vmul.f32 %v347_v44, %v212_v5 }
  0xb8   :  { %v377_v9 = vmul.f32 %v312_v36, %v194_v7  ;;  %v204_v10 = vpop.f32.mrf.mxu1  ;;  %v388_v21 = vmul.f32 %v367_v15, %v222_v6 }
  0xb9   :  { %v381_v12 = vmul.f32 %v332_v39, %v204_v10 }
  0xba   :  { %v514_v13 = vpack.c.bf16 %v377_v9, %v376_v8 }
  0xbb   :  { %v524_v14 = vpack.c.bf16 %v381_v12, %v380_v11 }
  0xbc   :  { %546 = vst [vmem:[%s725_s3 + $0x8] sm:$0xff] %v514_v13  }
  0xbd   :  { %548 = vst [vmem:[%s725_s3 + $0x18] sm:$0xff] %v524_v14  }
  0xbe   :  { %v214_v16 = vpop.f32.mrf.mxu2 }
  0xbf   :  { %v385_v19 = vmul.f32 %v352_v4, %v214_v16  ;;  %v224_v20 = vpop.f32.mrf.mxu3 }
  0xc0   :  { %v389_v22 = vmul.f32 %v372_v17, %v224_v20 }
  0xc1   :  { %v534_v23 = vpack.c.bf16 %v385_v19, %v384_v18 }
  0xc2   :  { %v544_v24 = vpack.c.bf16 %v389_v22, %v388_v21 }
  0xc3   :  { %550 = vst [vmem:[%s725_s3 + $0x28] sm:$0xff] %v534_v23  }
  0xc4   :  { %552 = vst [vmem:[%s725_s3 + $0x38] sm:$0xff] %v544_v24  }

// kernel: run.20
= control target key start
LH: loop header
LB: loop body
LE: loop exit
PB: predicated region body
PF: predicated region fallthrough
CT: control target
= control target key end

     0   :  { %v531_v0 = vmov 0   ;;  %s689_s2 = inlined_call_operand.vmem [shape: f32[128,1], index: 2, kind: input, shape index: {}]   ;;  %s690_s1 = inlined_call_operand.vmem [shape: bf16[128,128], index: 1, kind: input, shape index: {}]   ;;  %s691_s3 = inlined_call_operand.vmem [shape: f32[1,128], index: 3, kind: input, shape index: {}]   ;;  %s692_s0 = inlined_call_operand.vmem [shape: s8[128,128], index: 0, kind: input, shape index: {}]   ;;  %s693_s4 = inlined_call_operand.vmem [shape: bf16[128,128], index: 4, kind: output, shape index: {}]  }
   0x1   :  { %528 = vset.pattern.permute.xlu0 %v531_v0  ;;  %v266_v1 = vld [vmem:[%s689_s2] sm:$0xff]  ;;  %v455_v2 = vld [vmem:[%s690_s1 + $0x38] sm:$0xff]  ;;  %529 = vset.pattern.permute.xlu1 %v531_v0  ;;  %v268_v3 = vld [vmem:[%s689_s2 + $0x10] sm:$0xff] }
   0x2   :  { %284 = vperm.xlu0 %528, %v266_v1   ;;  %530 = vset.pattern.permute.xlu2 %v531_v0  ;;  %v454_v4 = vld [vmem:[%s690_s1 + $0x30] sm:$0xff]  ;;  %v267_v5 = vld [vmem:[%s689_s2 + $0x8] sm:$0xff]  ;;  %v270_v7 = vld [vmem:[%s689_s2 + $0x20] sm:$0xff] }
   0x3   :  { %166 = vmatpush.bf16.msra.mxu0 %v455_v2  ;;  %503 = vmatpush.bf16.msra.mxu1 %v455_v2  ;;  %v453_v6 = vld [vmem:[%s690_s1 + $0x28] sm:$0xff]  ;;  %v269_v8 = vld [vmem:[%s689_s2 + $0x18] sm:$0xff]  ;;  %v452_v9 = vld [vmem:[%s690_s1 + $0x20] sm:$0xff] }
   0x4   :  { %504 = vmatpush.bf16.msra.mxu2 %v455_v2  ;;  %505 = vmatpush.bf16.msra.mxu3 %v455_v2  ;;  %v271_v10 = vld [vmem:[%s689_s2 + $0x28] sm:$0xff]  ;;  %v272_v11 = vld [vmem:[%s689_s2 + $0x30] sm:$0xff]  ;;  %v451_v12 = vld [vmem:[%s690_s1 + $0x18] sm:$0xff] }
   0x5   :  { %294 = vperm.xlu1 %529, %v268_v3   ;;  %304 = vperm.xlu2 %530, %v270_v7   ;;  %v273_v13 = vld [vmem:[%s689_s2 + $0x38] sm:$0xff]  ;;  %v450_v14 = vld [vmem:[%s690_s1 + $0x10] sm:$0xff]  ;;  %v602_v15 = vld [vmem:[%s692_s0] sm:$0xff] }
   0x6   :  { %v607_v16 = vld [vmem:[%s692_s0 + $0x8] sm:$0xff]  ;;  %v612_v17 = vld [vmem:[%s692_s0 + $0x10] sm:$0xff]  ;;  %v617_v18 = vld [vmem:[%s692_s0 + $0x18] sm:$0xff]  ;;  %v41_v19 = vunpack.c.0.s8 %v602_v15  ;;  %v42_v20 = vunpack.c.1.s8 %v602_v15  ;;  %v43_v47 = vunpack.c.2.s8 %v602_v15  ;;  %v44_v48 = vunpack.c.3.s8 %v602_v15 }
   0x7   :  { %167 = vmatpush.bf16.msra.mxu0 %v454_v4  ;;  %506 = vmatpush.bf16.msra.mxu1 %v454_v4  ;;  %v274_v21 = vld [vmem:[%s689_s2 + $0x40] sm:$0xff]  ;;  %v275_v22 = vld [vmem:[%s689_s2 + $0x48] sm:$0xff]  ;;  %v45_v24 = vunpack.c.0.s8 %v607_v16  ;;  %v46_v25 = vunpack.c.1.s8 %v607_v16  ;;  %v49_v26 = vunpack.c.0.s8 %v612_v17  ;;  %v50_v27 = vunpack.c.1.s8 %v612_v17  ;;  %v276_v32 = vld [vmem:[%s689_s2 + $0x50] sm:$0xff] }
   0x8   :  { %507 = vmatpush.bf16.msra.mxu2 %v454_v4  ;;  %508 = vmatpush.bf16.msra.mxu3 %v454_v4  ;;  %v449_v23 = vld [vmem:[%s690_s1 + $0x8] sm:$0xff]  ;;  %v53_v28 = vunpack.c.0.s8 %v617_v18  ;;  %v54_v29 = vunpack.c.1.s8 %v617_v18  ;;  %v57_v30 = vcvt.s32.f32 %v41_v19  ;;  %v58_v31 = vcvt.s32.f32 %v42_v20  ;;  %v448_v33 = vld [vmem:[%s690_s1] sm:$0xff]  ;;  %v277_v41 = vld [vmem:[%s689_s2 + $0x58] sm:$0xff] }
   0x9   :  { %v61_v34 = vcvt.s32.f32 %v45_v24  ;;  %v62_v35 = vcvt.s32.f32 %v46_v25  ;;  %v65_v36 = vcvt.s32.f32 %v49_v26  ;;  %v66_v37 = vcvt.s32.f32 %v50_v27  ;;  %v278_v42 = vld [vmem:[%s689_s2 + $0x60] sm:$0xff]  ;;  %v279_v46 = vld [vmem:[%s689_s2 + $0x68] sm:$0xff]  ;;  %v280_v49 = vld [vmem:[%s689_s2 + $0x70] sm:$0xff] }
   0xa   :  { %289 = vperm.xlu0 %528, %v267_v5   ;;  %v69_v38 = vcvt.s32.f32 %v53_v28  ;;  %v70_v39 = vcvt.s32.f32 %v54_v29  ;;  %v73_v40 = vpack.c.bf16 %v58_v31, %v57_v30  ;;  %v281_v50 = vld [vmem:[%s689_s2 + $0x78] sm:$0xff]  ;;  %v47_v51 = vunpack.c.2.s8 %v607_v16 }
   0xb   :  { %168 = vmatpush.bf16.msra.mxu0 %v453_v6  ;;  %509 = vmatpush.bf16.msra.mxu1 %v453_v6  ;;  %v75_v43 = vpack.c.bf16 %v62_v35, %v61_v34  ;;  %v77_v44 = vpack.c.bf16 %v66_v37, %v65_v36  ;;  %v48_v52 = vunpack.c.3.s8 %v607_v16  ;;  %v51_v53 = vunpack.c.2.s8 %v612_v17 }
   0xc   :  { %510 = vmatpush.bf16.msra.mxu2 %v453_v6  ;;  %511 = vmatpush.bf16.msra.mxu3 %v453_v6  ;;  %v79_v45 = vpack.c.bf16 %v70_v39, %v69_v38  ;;  %v52_v54 = vunpack.c.3.s8 %v612_v17  ;;  %v55_v55 = vunpack.c.2.s8 %v617_v18  ;;  %v56_v56 = vunpack.c.3.s8 %v617_v18 }
   0xd   :  { %299 = vperm.xlu1 %529, %v269_v8   ;;  %309 = vperm.xlu2 %530, %v271_v10   ;;  %v59_v57 = vcvt.s32.f32 %v43_v47  ;;  %v60_v58 = vcvt.s32.f32 %v44_v48  ;;  %v63_v59 = vcvt.s32.f32 %v47_v51  ;;  %v64_v60 = vcvt.s32.f32 %v48_v52 }
   0xe   :  { %v67_v61 = vcvt.s32.f32 %v51_v53  ;;  %v68_v62 = vcvt.s32.f32 %v52_v54  ;;  %v71_v63 = vcvt.s32.f32 %v55_v55  ;;  %v72_v0 = vcvt.s32.f32 %v56_v56 }
   0xf   :  { %169 = vmatpush.bf16.msra.mxu0 %v452_v9  ;;  %512 = vmatpush.bf16.msra.mxu1 %v452_v9  ;;  %v74_v1 = vpack.c.bf16 %v60_v58, %v59_v57  ;;  %v76_v2 = vpack.c.bf16 %v64_v60, %v63_v59 }
  0x10   :  { %513 = vmatpush.bf16.msra.mxu2 %v452_v9  ;;  %514 = vmatpush.bf16.msra.mxu3 %v452_v9  ;;  %v78_v3 = vpack.c.bf16 %v68_v62, %v67_v61  ;;  %v80_v4 = vpack.c.bf16 %v72_v0, %v71_v63 }
  0x12   :  { %314 = vperm.xlu0 %528, %v272_v11  }
  0x13   :  { %170 = vmatpush.bf16.msra.mxu0 %v451_v12  ;;  %515 = vmatpush.bf16.msra.mxu1 %v451_v12 }
  0x14   :  { %516 = vmatpush.bf16.msra.mxu2 %v451_v12  ;;  %517 = vmatpush.bf16.msra.mxu3 %v451_v12 }
  0x15   :  { %319 = vperm.xlu1 %529, %v273_v13   ;;  %324 = vperm.xlu2 %530, %v274_v21  }
  0x17   :  { %171 = vmatpush.bf16.msra.mxu0 %v450_v14  ;;  %518 = vmatpush.bf16.msra.mxu1 %v450_v14 }
  0x18   :  { %519 = vmatpush.bf16.msra.mxu2 %v450_v14  ;;  %520 = vmatpush.bf16.msra.mxu3 %v450_v14 }
  0x1a   :  { %329 = vperm.xlu0 %528, %v275_v22  }
  0x1b   :  { %172 = vmatpush.bf16.msra.mxu0 %v449_v23  ;;  %521 = vmatpush.bf16.msra.mxu1 %v449_v23 }
  0x1c   :  { %522 = vmatpush.bf16.msra.mxu2 %v449_v23  ;;  %523 = vmatpush.bf16.msra.mxu3 %v449_v23 }
  0x1d   :  { %334 = vperm.xlu1 %529, %v276_v32   ;;  %339 = vperm.xlu2 %530, %v277_v41  }
  0x1f   :  { %173 = vmatpush.bf16.msra.mxu0 %v448_v33  ;;  %524 = vmatpush.bf16.msra.mxu1 %v448_v33 }
  0x20   :  { %525 = vmatpush.bf16.msra.mxu2 %v448_v33  ;;  %526 = vmatpush.bf16.msra.mxu3 %v448_v33 }
  0x22   :  { %344 = vperm.xlu0 %528, %v278_v42   ;;  %174 = vmatmul.bf16.vlgmr.msra.gmra.mxu0 %v73_v40 }
  0x23   :  { %184 = vmatmul.bf16.vlgmr.msra.gmra.mxu1 %v75_v43  ;;  %194 = vmatmul.bf16.vlgmr.msra.gmra.mxu2 %v77_v44 }
  0x24   :  { %204 = vmatmul.bf16.vlgmr.msra.gmra.mxu3 %v79_v45 }
  0x25   :  { %349 = vperm.xlu1 %529, %v279_v46   ;;  %354 = vperm.xlu2 %530, %v280_v49  }
  0x2a   :  { %359 = vperm.xlu0 %528, %v281_v50  }
  0x32   :  { %179 = vmatmul.bf16.gmra.mxu0 %v74_v1 }
  0x33   :  { %189 = vmatmul.bf16.gmra.mxu1 %v76_v2  ;;  %199 = vmatmul.bf16.gmra.mxu2 %v78_v3 }
  0x34   :  { %209 = vmatmul.bf16.gmra.mxu3 %v80_v4 }
  0x5f   :  { %v305_v9 = vpop.permute.xlu2 %304 }
  0x67   :  { %v310_v13 = vpop.permute.xlu2 %309 }
  0x6f   :  { %v325_v25 = vpop.permute.xlu2 %324 }
  0x74   :  { %v285_v5 = vpop.permute.xlu0 %284 }
  0x77   :  { %v295_v6 = vpop.permute.xlu1 %294  ;;  %v340_v40 = vpop.permute.xlu2 %339 }
  0x7c   :  { %v290_v7 = vpop.permute.xlu0 %289 }
  0x7f   :  { %v300_v8 = vpop.permute.xlu1 %299  ;;  %v355_v51 = vpop.permute.xlu2 %354 }
  0x84   :  { %v315_v10 = vpop.permute.xlu0 %314 }
  0x87   :  { %v320_v11 = vpop.permute.xlu1 %319 }
  0x8c   :  { %v330_v15 = vpop.permute.xlu0 %329 }
  0x8f   :  { %v335_v16 = vpop.permute.xlu1 %334 }
  0x94   :  { %v345_v28 = vpop.permute.xlu0 %344 }
  0x97   :  { %v350_v29 = vpop.permute.xlu1 %349 }
  0x9c   :  { %v360_v53 = vpop.permute.xlu0 %359 }
  0x9f   :  { %v175_v12 = vpop.f32.mrf.mxu0 }
  0xa0   :  { %v185_v14 = vpop.f32.mrf.mxu1  ;;  %v362_v20 = vmul.f32 %v285_v5, %v175_v12 }
  0xa1   :  { %v366_v23 = vmul.f32 %v305_v9, %v185_v14 }
  0xa6   :  { %v195_v17 = vpop.f32.mrf.mxu2 }
  0xa7   :  { %v205_v18 = vpop.f32.mrf.mxu3  ;;  %v177_v19 = vpop.f32.mrf.mxu0  ;;  %v370_v31 = vmul.f32 %v325_v25, %v195_v17 }
  0xa8   :  { %v363_v21 = vmul.f32 %v290_v7, %v177_v19  ;;  %v187_v22 = vpop.f32.mrf.mxu1  ;;  %v374_v35 = vmul.f32 %v345_v28, %v205_v18 }
  0xa9   :  { %v367_v24 = vmul.f32 %v310_v13, %v187_v22 }
  0xaa   :  { %v459_v26 = vpack.c.bf16 %v363_v21, %v362_v20 }
  0xab   :  { %v469_v27 = vpack.c.bf16 %v367_v24, %v366_v23 }
  0xac   :  { %460 = vst [vmem:[%s693_s4] sm:$0xff] %v459_v26  }
  0xad   :  { %497 = vst [vmem:[%s693_s4 + $0x10] sm:$0xff] %v469_v27  }
  0xae   :  { %v197_v30 = vpop.f32.mrf.mxu2 }
  0xaf   :  { %v371_v32 = vmul.f32 %v330_v15, %v197_v30  ;;  %v207_v33 = vpop.f32.mrf.mxu3  ;;  %v180_v34 = vpop.f32.mrf.mxu0 }
  0xb0   :  { %v375_v36 = vmul.f32 %v350_v29, %v207_v33  ;;  %v190_v37 = vpop.f32.mrf.mxu1  ;;  %v364_v44 = vmul.f32 %v295_v6, %v180_v34 }
  0xb1   :  { %v479_v38 = vpack.c.bf16 %v371_v32, %v370_v31  ;;  %v368_v47 = vmul.f32 %v315_v10, %v190_v37 }
  0xb2   :  { %v489_v39 = vpack.c.bf16 %v375_v36, %v374_v35 }
  0xb3   :  { %499 = vst [vmem:[%s693_s4 + $0x20] sm:$0xff] %v479_v38  }
  0xb4   :  { %501 = vst [vmem:[%s693_s4 + $0x30] sm:$0xff] %v489_v39  }
  0xb6   :  { %v200_v41 = vpop.f32.mrf.mxu2 }
  0xb7   :  { %v210_v42 = vpop.f32.mrf.mxu3  ;;  %v182_v43 = vpop.f32.mrf.mxu0  ;;  %v372_v54 = vmul.f32 %v335_v16, %v200_v41 }
  0xb8   :  { %v365_v45 = vmul.f32 %v300_v8, %v182_v43  ;;  %v192_v46 = vpop.f32.mrf.mxu1  ;;  %v376_v57 = vmul.f32 %v355_v51, %v210_v42 }
  0xb9   :  { %v369_v48 = vmul.f32 %v320_v11, %v192_v46 }
  0xba   :  { %v464_v49 = vpack.c.bf16 %v365_v45, %v364_v44 }
  0xbb   :  { %v474_v50 = vpack.c.bf16 %v369_v48, %v368_v47 }
  0xbc   :  { %496 = vst [vmem:[%s693_s4 + $0x8] sm:$0xff] %v464_v49  }
  0xbd   :  { %498 = vst [vmem:[%s693_s4 + $0x18] sm:$0xff] %v474_v50  }
  0xbe   :  { %v202_v52 = vpop.f32.mrf.mxu2 }
  0xbf   :  { %v373_v55 = vmul.f32 %v340_v40, %v202_v52  ;;  %v212_v56 = vpop.f32.mrf.mxu3 }
  0xc0   :  { %v377_v58 = vmul.f32 %v360_v53, %v212_v56 }
  0xc1   :  { %v484_v59 = vpack.c.bf16 %v373_v55, %v372_v54 }
  0xc2   :  { %v494_v60 = vpack.c.bf16 %v377_v58, %v376_v57 }
  0xc3   :  { %500 = vst [vmem:[%s693_s4 + $0x28] sm:$0xff] %v484_v59  }
  0xc4   :  { %502 = vst [vmem:[%s693_s4 + $0x38] sm:$0xff] %v494_v60  }

// kernel: run.21
= control target key start
LH: loop header
LB: loop body
LE: loop exit
PB: predicated region body
PF: predicated region fallthrough
CT: control target
= control target key end

     0   :  { %v568_v0 = vmov 0   ;;  %s747_s2 = inlined_call_operand.vmem [shape: f32[128,1], index: 2, kind: input, shape index: {}]   ;;  %s748_s1 = inlined_call_operand.vmem [shape: bf16[128,128], index: 1, kind: input, shape index: {}]   ;;  %s749_s0 = inlined_call_operand.vmem [shape: s8[128,128], index: 0, kind: input, shape index: {}]   ;;  %s750_s3 = inlined_call_operand.vmem [shape: f32[1,128], index: 3, kind: input, shape index: {}]   ;;  %s751_s4 = inlined_call_operand.vmem [shape: bf16[128,128], index: 4, kind: output, shape index: {}]  }
   0x1   :  { %564 = vset.pattern.permute.xlu0 %v568_v0  ;;  %v266_v1 = vld [vmem:[%s747_s2] sm:$0xff]  ;;  %v491_v2 = vld [vmem:[%s748_s1 + $0x38] sm:$0xff]  ;;  %565 = vset.pattern.permute.xlu1 %v568_v0  ;;  %v268_v3 = vld [vmem:[%s747_s2 + $0x10] sm:$0xff] }
   0x2   :  { %284 = vperm.xlu0 %564, %v266_v1   ;;  %566 = vset.pattern.permute.xlu2 %v568_v0  ;;  %v490_v4 = vld [vmem:[%s748_s1 + $0x30] sm:$0xff]  ;;  %v267_v5 = vld [vmem:[%s747_s2 + $0x8] sm:$0xff]  ;;  %v270_v7 = vld [vmem:[%s747_s2 + $0x20] sm:$0xff] }
   0x3   :  { %166 = vmatpush.bf16.msra.mxu0 %v491_v2  ;;  %539 = vmatpush.bf16.msra.mxu1 %v491_v2  ;;  %v489_v6 = vld [vmem:[%s748_s1 + $0x28] sm:$0xff]  ;;  %v269_v8 = vld [vmem:[%s747_s2 + $0x18] sm:$0xff]  ;;  %v488_v9 = vld [vmem:[%s748_s1 + $0x20] sm:$0xff] }
   0x4   :  { %540 = vmatpush.bf16.msra.mxu2 %v491_v2  ;;  %541 = vmatpush.bf16.msra.mxu3 %v491_v2  ;;  %v271_v10 = vld [vmem:[%s747_s2 + $0x28] sm:$0xff]  ;;  %v272_v11 = vld [vmem:[%s747_s2 + $0x30] sm:$0xff]  ;;  %v487_v12 = vld [vmem:[%s748_s1 + $0x18] sm:$0xff] }
   0x5   :  { %294 = vperm.xlu1 %565, %v268_v3   ;;  %304 = vperm.xlu2 %566, %v270_v7   ;;  %v273_v13 = vld [vmem:[%s747_s2 + $0x38] sm:$0xff]  ;;  %v486_v14 = vld [vmem:[%s748_s1 + $0x10] sm:$0xff]  ;;  %v639_v15 = vld [vmem:[%s749_s0] sm:$0xff] }
   0x6   :  { %v644_v16 = vld [vmem:[%s749_s0 + $0x8] sm:$0xff]  ;;  %v649_v17 = vld [vmem:[%s749_s0 + $0x10] sm:$0xff]  ;;  %v654_v18 = vld [vmem:[%s749_s0 + $0x18] sm:$0xff]  ;;  %v41_v19 = vunpack.c.0.s8 %v639_v15  ;;  %v42_v20 = vunpack.c.1.s8 %v639_v15  ;;  %v43_v47 = vunpack.c.2.s8 %v639_v15  ;;  %v44_v48 = vunpack.c.3.s8 %v639_v15 }
   0x7   :  { %167 = vmatpush.bf16.msra.mxu0 %v490_v4  ;;  %542 = vmatpush.bf16.msra.mxu1 %v490_v4  ;;  %v274_v21 = vld [vmem:[%s747_s2 + $0x40] sm:$0xff]  ;;  %v275_v22 = vld [vmem:[%s747_s2 + $0x48] sm:$0xff]  ;;  %v45_v24 = vunpack.c.0.s8 %v644_v16  ;;  %v46_v25 = vunpack.c.1.s8 %v644_v16  ;;  %v49_v26 = vunpack.c.0.s8 %v649_v17  ;;  %v50_v27 = vunpack.c.1.s8 %v649_v17  ;;  %v276_v32 = vld [vmem:[%s747_s2 + $0x50] sm:$0xff] }
   0x8   :  { %543 = vmatpush.bf16.msra.mxu2 %v490_v4  ;;  %544 = vmatpush.bf16.msra.mxu3 %v490_v4  ;;  %v485_v23 = vld [vmem:[%s748_s1 + $0x8] sm:$0xff]  ;;  %v53_v28 = vunpack.c.0.s8 %v654_v18  ;;  %v54_v29 = vunpack.c.1.s8 %v654_v18  ;;  %v57_v30 = vcvt.s32.f32 %v41_v19  ;;  %v58_v31 = vcvt.s32.f32 %v42_v20  ;;  %v484_v33 = vld [vmem:[%s748_s1] sm:$0xff]  ;;  %v277_v41 = vld [vmem:[%s747_s2 + $0x58] sm:$0xff] }
   0x9   :  { %v61_v34 = vcvt.s32.f32 %v45_v24  ;;  %v62_v35 = vcvt.s32.f32 %v46_v25  ;;  %v65_v36 = vcvt.s32.f32 %v49_v26  ;;  %v66_v37 = vcvt.s32.f32 %v50_v27  ;;  %v278_v42 = vld [vmem:[%s747_s2 + $0x60] sm:$0xff]  ;;  %v279_v46 = vld [vmem:[%s747_s2 + $0x68] sm:$0xff]  ;;  %v280_v49 = vld [vmem:[%s747_s2 + $0x70] sm:$0xff] }
   0xa   :  { %289 = vperm.xlu0 %564, %v267_v5   ;;  %v69_v38 = vcvt.s32.f32 %v53_v28  ;;  %v70_v39 = vcvt.s32.f32 %v54_v29  ;;  %v73_v40 = vpack.c.bf16 %v58_v31, %v57_v30  ;;  %v281_v50 = vld [vmem:[%s747_s2 + $0x78] sm:$0xff]  ;;  %v47_v51 = vunpack.c.2.s8 %v644_v16 }
   0xb   :  { %168 = vmatpush.bf16.msra.mxu0 %v489_v6  ;;  %545 = vmatpush.bf16.msra.mxu1 %v489_v6  ;;  %v75_v43 = vpack.c.bf16 %v62_v35, %v61_v34  ;;  %v77_v44 = vpack.c.bf16 %v66_v37, %v65_v36  ;;  %v48_v52 = vunpack.c.3.s8 %v644_v16  ;;  %v51_v53 = vunpack.c.2.s8 %v649_v17 }
   0xc   :  { %546 = vmatpush.bf16.msra.mxu2 %v489_v6  ;;  %547 = vmatpush.bf16.msra.mxu3 %v489_v6  ;;  %v79_v45 = vpack.c.bf16 %v70_v39, %v69_v38  ;;  %v52_v54 = vunpack.c.3.s8 %v649_v17  ;;  %v55_v55 = vunpack.c.2.s8 %v654_v18  ;;  %v56_v56 = vunpack.c.3.s8 %v654_v18  ;;  %v705_v18 = vld [vmem:[%s750_s3] ss:$0 sm:$0xff] }
   0xd   :  { %299 = vperm.xlu1 %565, %v269_v8   ;;  %309 = vperm.xlu2 %566, %v271_v10   ;;  %v59_v57 = vcvt.s32.f32 %v43_v47  ;;  %v60_v58 = vcvt.s32.f32 %v44_v48  ;;  %v63_v59 = vcvt.s32.f32 %v47_v51  ;;  %v64_v60 = vcvt.s32.f32 %v48_v52 }
   0xe   :  { %v67_v61 = vcvt.s32.f32 %v51_v53  ;;  %v68_v62 = vcvt.s32.f32 %v52_v54  ;;  %v71_v63 = vcvt.s32.f32 %v55_v55  ;;  %v72_v0 = vcvt.s32.f32 %v56_v56 }
   0xf   :  { %169 = vmatpush.bf16.msra.mxu0 %v488_v9  ;;  %548 = vmatpush.bf16.msra.mxu1 %v488_v9  ;;  %v74_v1 = vpack.c.bf16 %v60_v58, %v59_v57  ;;  %v76_v2 = vpack.c.bf16 %v64_v60, %v63_v59 }
  0x10   :  { %549 = vmatpush.bf16.msra.mxu2 %v488_v9  ;;  %550 = vmatpush.bf16.msra.mxu3 %v488_v9  ;;  %v78_v3 = vpack.c.bf16 %v68_v62, %v67_v61  ;;  %v80_v4 = vpack.c.bf16 %v72_v0, %v71_v63 }
  0x12   :  { %314 = vperm.xlu0 %564, %v272_v11  }
  0x13   :  { %170 = vmatpush.bf16.msra.mxu0 %v487_v12  ;;  %551 = vmatpush.bf16.msra.mxu1 %v487_v12 }
  0x14   :  { %552 = vmatpush.bf16.msra.mxu2 %v487_v12  ;;  %553 = vmatpush.bf16.msra.mxu3 %v487_v12 }
  0x15   :  { %319 = vperm.xlu1 %565, %v273_v13   ;;  %324 = vperm.xlu2 %566, %v274_v21  }
  0x17   :  { %171 = vmatpush.bf16.msra.mxu0 %v486_v14  ;;  %554 = vmatpush.bf16.msra.mxu1 %v486_v14 }
  0x18   :  { %555 = vmatpush.bf16.msra.mxu2 %v486_v14  ;;  %556 = vmatpush.bf16.msra.mxu3 %v486_v14 }
  0x1a   :  { %329 = vperm.xlu0 %564, %v275_v22  }
  0x1b   :  { %172 = vmatpush.bf16.msra.mxu0 %v485_v23  ;;  %557 = vmatpush.bf16.msra.mxu1 %v485_v23 }
  0x1c   :  { %558 = vmatpush.bf16.msra.mxu2 %v485_v23  ;;  %559 = vmatpush.bf16.msra.mxu3 %v485_v23 }
  0x1d   :  { %334 = vperm.xlu1 %565, %v276_v32   ;;  %339 = vperm.xlu2 %566, %v277_v41  }
  0x1f   :  { %173 = vmatpush.bf16.msra.mxu0 %v484_v33  ;;  %560 = vmatpush.bf16.msra.mxu1 %v484_v33 }
  0x20   :  { %561 = vmatpush.bf16.msra.mxu2 %v484_v33  ;;  %562 = vmatpush.bf16.msra.mxu3 %v484_v33 }
  0x22   :  { %344 = vperm.xlu0 %564, %v278_v42   ;;  %174 = vmatmul.bf16.vlgmr.msra.gmra.mxu0 %v73_v40 }
  0x23   :  { %184 = vmatmul.bf16.vlgmr.msra.gmra.mxu1 %v75_v43  ;;  %194 = vmatmul.bf16.vlgmr.msra.gmra.mxu2 %v77_v44 }
  0x24   :  { %204 = vmatmul.bf16.vlgmr.msra.gmra.mxu3 %v79_v45 }
  0x25   :  { %349 = vperm.xlu1 %565, %v279_v46   ;;  %354 = vperm.xlu2 %566, %v280_v49  }
  0x2a   :  { %359 = vperm.xlu0 %564, %v281_v50  }
  0x32   :  { %179 = vmatmul.bf16.gmra.mxu0 %v74_v1 }
  0x33   :  { %189 = vmatmul.bf16.gmra.mxu1 %v76_v2  ;;  %199 = vmatmul.bf16.gmra.mxu2 %v78_v3 }
  0x34   :  { %209 = vmatmul.bf16.gmra.mxu3 %v80_v4 }
  0x5f   :  { %v305_v9 = vpop.permute.xlu2 %304 }
  0x67   :  { %v310_v12 = vpop.permute.xlu2 %309 }
  0x6f   :  { %v325_v20 = vpop.permute.xlu2 %324 }
  0x74   :  { %v285_v5 = vpop.permute.xlu0 %284 }
  0x77   :  { %v295_v6 = vpop.permute.xlu1 %294  ;;  %v340_v49 = vpop.permute.xlu2 %339 }
  0x7c   :  { %v290_v7 = vpop.permute.xlu0 %289 }
  0x7f   :  { %v300_v8 = vpop.permute.xlu1 %299 }
  0x84   :  { %v315_v10 = vpop.permute.xlu0 %314 }
  0x87   :  { %v320_v11 = vpop.permute.xlu1 %319 }
  0x8c   :  { %v330_v15 = vpop.permute.xlu0 %329 }
  0x8f   :  { %v335_v16 = vpop.permute.xlu1 %334 }
  0x94   :  { %v345_v30 = vpop.permute.xlu0 %344 }
  0x97   :  { %v350_v38 = vpop.permute.xlu1 %349 }
  0x9f   :  { %v175_v13 = vpop.f32.mrf.mxu0 }
  0xa0   :  { %v185_v14 = vpop.f32.mrf.mxu1  ;;  %v362_v17 = vmul.f32 %v285_v5, %v175_v13  ;;  %v355_v5 = vpop.permute.xlu2 %354 }
  0xa1   :  { %v366_v19 = vmul.f32 %v305_v9, %v185_v14 }
  0xa2   :  { %v382_v24 = vadd.f32 %v705_v18, %v362_v17 }
  0xa3   :  { %v386_v27 = vadd.f32 %v705_v18, %v366_v19  ;;  %v360_v19 = vpop.permute.xlu0 %359 }
  0xa4   :  { %v398_v33 = vmax.f32 %v382_v24, 0.0 }
  0xa5   :  { %v402_v36 = vmax.f32 %v386_v27, 0.0 }
  0xa6   :  { %v195_v21 = vpop.f32.mrf.mxu2 }
  0xa7   :  { %v205_v22 = vpop.f32.mrf.mxu3  ;;  %v177_v23 = vpop.f32.mrf.mxu0  ;;  %v370_v31 = vmul.f32 %v325_v20, %v195_v21 }
  0xa8   :  { %v363_v25 = vmul.f32 %v290_v7, %v177_v23  ;;  %v187_v26 = vpop.f32.mrf.mxu1  ;;  %v374_v34 = vmul.f32 %v345_v30, %v205_v22 }
  0xa9   :  { %v367_v28 = vmul.f32 %v310_v12, %v187_v26  ;;  %v390_v41 = vadd.f32 %v705_v18, %v370_v31 }
  0xaa   :  { %v383_v29 = vadd.f32 %v705_v18, %v363_v25  ;;  %v394_v46 = vadd.f32 %v705_v18, %v374_v34 }
  0xab   :  { %v387_v32 = vadd.f32 %v705_v18, %v367_v28  ;;  %v406_v52 = vmax.f32 %v390_v41, 0.0 }
  0xac   :  { %v399_v35 = vmax.f32 %v383_v29, 0.0  ;;  %v410_v54 = vmax.f32 %v394_v46, 0.0 }
  0xad   :  { %v403_v37 = vmax.f32 %v387_v32, 0.0 }
  0xae   :  { %v495_v39 = vpack.c.bf16 %v399_v35, %v398_v33  ;;  %v197_v40 = vpop.f32.mrf.mxu2 }
  0xaf   :  { %v505_v42 = vpack.c.bf16 %v403_v37, %v402_v36  ;;  %v371_v43 = vmul.f32 %v330_v15, %v197_v40  ;;  %v207_v44 = vpop.f32.mrf.mxu3  ;;  %v180_v45 = vpop.f32.mrf.mxu0 }
  0xb0   :  { %496 = vst [vmem:[%s751_s4] sm:$0xff] %v495_v39   ;;  %v375_v47 = vmul.f32 %v350_v38, %v207_v44  ;;  %v190_v48 = vpop.f32.mrf.mxu1  ;;  %v364_v56 = vmul.f32 %v295_v6, %v180_v45 }
  0xb1   :  { %533 = vst [vmem:[%s751_s4 + $0x10] sm:$0xff] %v505_v42   ;;  %v391_v50 = vadd.f32 %v705_v18, %v371_v43  ;;  %v368_v58 = vmul.f32 %v315_v10, %v190_v48 }
  0xb2   :  { %v395_v51 = vadd.f32 %v705_v18, %v375_v47  ;;  %v384_v63 = vadd.f32 %v705_v18, %v364_v56 }
  0xb3   :  { %v407_v53 = vmax.f32 %v391_v50, 0.0  ;;  %v388_v2 = vadd.f32 %v705_v18, %v368_v58 }
  0xb4   :  { %v411_v55 = vmax.f32 %v395_v51, 0.0  ;;  %v400_v9 = vmax.f32 %v384_v63, 0.0 }
  0xb5   :  { %v515_v57 = vpack.c.bf16 %v407_v53, %v406_v52  ;;  %v404_v13 = vmax.f32 %v388_v2, 0.0 }
  0xb6   :  { %v525_v59 = vpack.c.bf16 %v411_v55, %v410_v54  ;;  %v200_v60 = vpop.f32.mrf.mxu2 }
  0xb7   :  { %535 = vst [vmem:[%s751_s4 + $0x20] sm:$0xff] %v515_v57   ;;  %v210_v61 = vpop.f32.mrf.mxu3  ;;  %v182_v62 = vpop.f32.mrf.mxu0  ;;  %v372_v6 = vmul.f32 %v335_v16, %v200_v60 }
  0xb8   :  { %537 = vst [vmem:[%s751_s4 + $0x30] sm:$0xff] %v525_v59   ;;  %v365_v0 = vmul.f32 %v300_v8, %v182_v62  ;;  %v192_v1 = vpop.f32.mrf.mxu1  ;;  %v376_v10 = vmul.f32 %v355_v5, %v210_v61 }
  0xb9   :  { %v369_v3 = vmul.f32 %v320_v11, %v192_v1  ;;  %v392_v8 = vadd.f32 %v705_v18, %v372_v6 }
  0xba   :  { %v385_v4 = vadd.f32 %v705_v18, %v365_v0  ;;  %v396_v11 = vadd.f32 %v705_v18, %v376_v10 }
  0xbb   :  { %v389_v7 = vadd.f32 %v705_v18, %v369_v3  ;;  %v408_v25 = vmax.f32 %v392_v8, 0.0 }
  0xbc   :  { %v401_v12 = vmax.f32 %v385_v4, 0.0  ;;  %v412_v27 = vmax.f32 %v396_v11, 0.0 }
  0xbd   :  { %v405_v14 = vmax.f32 %v389_v7, 0.0 }
  0xbe   :  { %v500_v15 = vpack.c.bf16 %v401_v12, %v400_v9  ;;  %v202_v17 = vpop.f32.mrf.mxu2 }
  0xbf   :  { %v510_v20 = vpack.c.bf16 %v405_v14, %v404_v13  ;;  %v373_v21 = vmul.f32 %v340_v49, %v202_v17  ;;  %v212_v22 = vpop.f32.mrf.mxu3 }
  0xc0   :  { %532 = vst [vmem:[%s751_s4 + $0x8] sm:$0xff] %v500_v15   ;;  %v377_v16 = vmul.f32 %v360_v19, %v212_v22 }
  0xc1   :  { %534 = vst [vmem:[%s751_s4 + $0x18] sm:$0xff] %v510_v20   ;;  %v393_v23 = vadd.f32 %v705_v18, %v373_v21 }
  0xc2   :  { %v397_v24 = vadd.f32 %v705_v18, %v377_v16 }
  0xc3   :  { %v409_v26 = vmax.f32 %v393_v23, 0.0 }
  0xc4   :  { %v413_v28 = vmax.f32 %v397_v24, 0.0 }
  0xc5   :  { %v520_v29 = vpack.c.bf16 %v409_v26, %v408_v25 }
  0xc6   :  { %v530_v30 = vpack.c.bf16 %v413_v28, %v412_v27 }
  0xc7   :  { %536 = vst [vmem:[%s751_s4 + $0x28] sm:$0xff] %v520_v29  }
  0xc8   :  { %538 = vst [vmem:[%s751_s4 + $0x38] sm:$0xff] %v530_v30  }

// kernel: run.24
= control target key start
LH: loop header
LB: loop body
LE: loop exit
PB: predicated region body
PF: predicated region fallthrough
CT: control target
= control target key end

     0   :  { %v489_v0 = vmov 0   ;;  %s692_s2 = inlined_call_operand.vmem [shape: f32[128,1], index: 2, kind: input, shape index: {}]   ;;  %s693_s1 = inlined_call_operand.vmem [shape: bf16[128,128], index: 1, kind: input, shape index: {}]   ;;  %s694_s0 = inlined_call_operand.vmem [shape: s8[128,128], index: 0, kind: input, shape index: {}]   ;;  %s695_s3 = inlined_call_operand.vmem [shape: f32[1,128], index: 3, kind: input, shape index: {}]   ;;  %s696_s4 = inlined_call_operand.vmem [shape: f32[128,128], index: 4, kind: output, shape index: {}]  }
   0x1   :  { %485 = vset.pattern.permute.xlu0 %v489_v0  ;;  %v266_v1 = vld [vmem:[%s692_s2] sm:$0xff]  ;;  %v459_v2 = vld [vmem:[%s693_s1 + $0x38] sm:$0xff]  ;;  %486 = vset.pattern.permute.xlu1 %v489_v0  ;;  %v268_v3 = vld [vmem:[%s692_s2 + $0x10] sm:$0xff] }
   0x2   :  { %284 = vperm.xlu0 %485, %v266_v1   ;;  %487 = vset.pattern.permute.xlu2 %v489_v0  ;;  %v458_v4 = vld [vmem:[%s693_s1 + $0x30] sm:$0xff]  ;;  %v267_v5 = vld [vmem:[%s692_s2 + $0x8] sm:$0xff]  ;;  %v270_v7 = vld [vmem:[%s692_s2 + $0x20] sm:$0xff] }
   0x3   :  { %166 = vmatpush.bf16.msra.mxu0 %v459_v2  ;;  %460 = vmatpush.bf16.msra.mxu1 %v459_v2  ;;  %v457_v6 = vld [vmem:[%s693_s1 + $0x28] sm:$0xff]  ;;  %v269_v8 = vld [vmem:[%s692_s2 + $0x18] sm:$0xff]  ;;  %v456_v9 = vld [vmem:[%s693_s1 + $0x20] sm:$0xff] }
   0x4   :  { %461 = vmatpush.bf16.msra.mxu2 %v459_v2  ;;  %462 = vmatpush.bf16.msra.mxu3 %v459_v2  ;;  %v271_v10 = vld [vmem:[%s692_s2 + $0x28] sm:$0xff]  ;;  %v272_v11 = vld [vmem:[%s692_s2 + $0x30] sm:$0xff]  ;;  %v455_v12 = vld [vmem:[%s693_s1 + $0x18] sm:$0xff] }
   0x5   :  { %294 = vperm.xlu1 %486, %v268_v3   ;;  %304 = vperm.xlu2 %487, %v270_v7   ;;  %v273_v13 = vld [vmem:[%s692_s2 + $0x38] sm:$0xff]  ;;  %v454_v14 = vld [vmem:[%s693_s1 + $0x10] sm:$0xff]  ;;  %v560_v15 = vld [vmem:[%s694_s0] sm:$0xff] }
   0x6   :  { %v565_v16 = vld [vmem:[%s694_s0 + $0x8] sm:$0xff]  ;;  %v570_v17 = vld [vmem:[%s694_s0 + $0x10] sm:$0xff]  ;;  %v575_v18 = vld [vmem:[%s694_s0 + $0x18] sm:$0xff]  ;;  %v41_v19 = vunpack.c.0.s8 %v560_v15  ;;  %v42_v20 = vunpack.c.1.s8 %v560_v15  ;;  %v43_v47 = vunpack.c.2.s8 %v560_v15  ;;  %v44_v48 = vunpack.c.3.s8 %v560_v15 }
   0x7   :  { %167 = vmatpush.bf16.msra.mxu0 %v458_v4  ;;  %463 = vmatpush.bf16.msra.mxu1 %v458_v4  ;;  %v274_v21 = vld [vmem:[%s692_s2 + $0x40] sm:$0xff]  ;;  %v275_v22 = vld [vmem:[%s692_s2 + $0x48] sm:$0xff]  ;;  %v45_v24 = vunpack.c.0.s8 %v565_v16  ;;  %v46_v25 = vunpack.c.1.s8 %v565_v16  ;;  %v49_v26 = vunpack.c.0.s8 %v570_v17  ;;  %v50_v27 = vunpack.c.1.s8 %v570_v17  ;;  %v276_v32 = vld [vmem:[%s692_s2 + $0x50] sm:$0xff] }
   0x8   :  { %464 = vmatpush.bf16.msra.mxu2 %v458_v4  ;;  %465 = vmatpush.bf16.msra.mxu3 %v458_v4  ;;  %v453_v23 = vld [vmem:[%s693_s1 + $0x8] sm:$0xff]  ;;  %v53_v28 = vunpack.c.0.s8 %v575_v18  ;;  %v54_v29 = vunpack.c.1.s8 %v575_v18  ;;  %v57_v30 = vcvt.s32.f32 %v41_v19  ;;  %v58_v31 = vcvt.s32.f32 %v42_v20  ;;  %v452_v33 = vld [vmem:[%s693_s1] sm:$0xff]  ;;  %v277_v41 = vld [vmem:[%s692_s2 + $0x58] sm:$0xff] }
   0x9   :  { %v61_v34 = vcvt.s32.f32 %v45_v24  ;;  %v62_v35 = vcvt.s32.f32 %v46_v25  ;;  %v65_v36 = vcvt.s32.f32 %v49_v26  ;;  %v66_v37 = vcvt.s32.f32 %v50_v27  ;;  %v278_v42 = vld [vmem:[%s692_s2 + $0x60] sm:$0xff]  ;;  %v279_v46 = vld [vmem:[%s692_s2 + $0x68] sm:$0xff]  ;;  %v280_v49 = vld [vmem:[%s692_s2 + $0x70] sm:$0xff] }
   0xa   :  { %289 = vperm.xlu0 %485, %v267_v5   ;;  %v69_v38 = vcvt.s32.f32 %v53_v28  ;;  %v70_v39 = vcvt.s32.f32 %v54_v29  ;;  %v73_v40 = vpack.c.bf16 %v58_v31, %v57_v30  ;;  %v281_v50 = vld [vmem:[%s692_s2 + $0x78] sm:$0xff]  ;;  %v47_v51 = vunpack.c.2.s8 %v565_v16 }
   0xb   :  { %168 = vmatpush.bf16.msra.mxu0 %v457_v6  ;;  %466 = vmatpush.bf16.msra.mxu1 %v457_v6  ;;  %v75_v43 = vpack.c.bf16 %v62_v35, %v61_v34  ;;  %v77_v44 = vpack.c.bf16 %v66_v37, %v65_v36  ;;  %v48_v52 = vunpack.c.3.s8 %v565_v16  ;;  %v51_v53 = vunpack.c.2.s8 %v570_v17 }
   0xc   :  { %467 = vmatpush.bf16.msra.mxu2 %v457_v6  ;;  %468 = vmatpush.bf16.msra.mxu3 %v457_v6  ;;  %v79_v45 = vpack.c.bf16 %v70_v39, %v69_v38  ;;  %v52_v54 = vunpack.c.3.s8 %v570_v17  ;;  %v55_v55 = vunpack.c.2.s8 %v575_v18  ;;  %v56_v56 = vunpack.c.3.s8 %v575_v18 }
   0xd   :  { %299 = vperm.xlu1 %486, %v269_v8   ;;  %309 = vperm.xlu2 %487, %v271_v10   ;;  %v59_v57 = vcvt.s32.f32 %v43_v47  ;;  %v60_v58 = vcvt.s32.f32 %v44_v48  ;;  %v63_v59 = vcvt.s32.f32 %v47_v51  ;;  %v64_v60 = vcvt.s32.f32 %v48_v52 }
   0xe   :  { %v67_v61 = vcvt.s32.f32 %v51_v53  ;;  %v68_v62 = vcvt.s32.f32 %v52_v54  ;;  %v71_v63 = vcvt.s32.f32 %v55_v55  ;;  %v72_v0 = vcvt.s32.f32 %v56_v56 }
   0xf   :  { %169 = vmatpush.bf16.msra.mxu0 %v456_v9  ;;  %469 = vmatpush.bf16.msra.mxu1 %v456_v9  ;;  %v74_v1 = vpack.c.bf16 %v60_v58, %v59_v57  ;;  %v76_v2 = vpack.c.bf16 %v64_v60, %v63_v59 }
  0x10   :  { %470 = vmatpush.bf16.msra.mxu2 %v456_v9  ;;  %471 = vmatpush.bf16.msra.mxu3 %v456_v9  ;;  %v78_v3 = vpack.c.bf16 %v68_v62, %v67_v61  ;;  %v80_v4 = vpack.c.bf16 %v72_v0, %v71_v63 }
  0x12   :  { %314 = vperm.xlu0 %485, %v272_v11  }
  0x13   :  { %170 = vmatpush.bf16.msra.mxu0 %v455_v12  ;;  %472 = vmatpush.bf16.msra.mxu1 %v455_v12 }
  0x14   :  { %473 = vmatpush.bf16.msra.mxu2 %v455_v12  ;;  %474 = vmatpush.bf16.msra.mxu3 %v455_v12 }
  0x15   :  { %319 = vperm.xlu1 %486, %v273_v13   ;;  %324 = vperm.xlu2 %487, %v274_v21  }
  0x17   :  { %171 = vmatpush.bf16.msra.mxu0 %v454_v14  ;;  %475 = vmatpush.bf16.msra.mxu1 %v454_v14 }
  0x18   :  { %476 = vmatpush.bf16.msra.mxu2 %v454_v14  ;;  %477 = vmatpush.bf16.msra.mxu3 %v454_v14  ;;  %v626_v14 = vld [vmem:[%s695_s3] ss:$0 sm:$0xff] }
  0x1a   :  { %329 = vperm.xlu0 %485, %v275_v22  }
  0x1b   :  { %172 = vmatpush.bf16.msra.mxu0 %v453_v23  ;;  %478 = vmatpush.bf16.msra.mxu1 %v453_v23 }
  0x1c   :  { %479 = vmatpush.bf16.msra.mxu2 %v453_v23  ;;  %480 = vmatpush.bf16.msra.mxu3 %v453_v23 }
  0x1d   :  { %334 = vperm.xlu1 %486, %v276_v32   ;;  %339 = vperm.xlu2 %487, %v277_v41  }
  0x1f   :  { %173 = vmatpush.bf16.msra.mxu0 %v452_v33  ;;  %481 = vmatpush.bf16.msra.mxu1 %v452_v33 }
  0x20   :  { %482 = vmatpush.bf16.msra.mxu2 %v452_v33  ;;  %483 = vmatpush.bf16.msra.mxu3 %v452_v33 }
  0x22   :  { %344 = vperm.xlu0 %485, %v278_v42   ;;  %174 = vmatmul.bf16.vlgmr.msra.gmra.mxu0 %v73_v40 }
  0x23   :  { %184 = vmatmul.bf16.vlgmr.msra.gmra.mxu1 %v75_v43  ;;  %194 = vmatmul.bf16.vlgmr.msra.gmra.mxu2 %v77_v44 }
  0x24   :  { %204 = vmatmul.bf16.vlgmr.msra.gmra.mxu3 %v79_v45 }
  0x25   :  { %349 = vperm.xlu1 %486, %v279_v46   ;;  %354 = vperm.xlu2 %487, %v280_v49  }
  0x2a   :  { %359 = vperm.xlu0 %485, %v281_v50  }
  0x32   :  { %179 = vmatmul.bf16.gmra.mxu0 %v74_v1 }
  0x33   :  { %189 = vmatmul.bf16.gmra.mxu1 %v76_v2  ;;  %199 = vmatmul.bf16.gmra.mxu2 %v78_v3 }
  0x34   :  { %209 = vmatmul.bf16.gmra.mxu3 %v80_v4 }
  0x5f   :  { %v305_v8 = vpop.permute.xlu2 %304 }
  0x67   :  { %v310_v11 = vpop.permute.xlu2 %309 }
  0x6f   :  { %v325_v19 = vpop.permute.xlu2 %324 }
  0x74   :  { %v285_v5 = vpop.permute.xlu0 %284 }
  0x77   :  { %v295_v6 = vpop.permute.xlu1 %294  ;;  %v340_v36 = vpop.permute.xlu2 %339 }
  0x7c   :  { %v290_v7 = vpop.permute.xlu0 %289 }
  0x7f   :  { %v300_v9 = vpop.permute.xlu1 %299  ;;  %v355_v50 = vpop.permute.xlu2 %354 }
  0x84   :  { %v315_v10 = vpop.permute.xlu0 %314 }
  0x87   :  { %v320_v12 = vpop.permute.xlu1 %319 }
  0x8c   :  { %v330_v13 = vpop.permute.xlu0 %329 }
  0x8f   :  { %v335_v22 = vpop.permute.xlu1 %334 }
  0x94   :  { %v345_v23 = vpop.permute.xlu0 %344 }
  0x97   :  { %v350_v37 = vpop.permute.xlu1 %349 }
  0x9c   :  { %v360_v0 = vpop.permute.xlu0 %359 }
  0x9f   :  { %v175_v15 = vpop.f32.mrf.mxu0 }
  0xa0   :  { %v362_v16 = vmul.f32 %v285_v5, %v175_v15  ;;  %v185_v17 = vpop.f32.mrf.mxu1 }
  0xa1   :  { %v366_v18 = vmul.f32 %v305_v8, %v185_v17 }
  0xa2   :  { %v382_v20 = vadd.f32 %v626_v14, %v362_v16 }
  0xa3   :  { %v386_v21 = vadd.f32 %v626_v14, %v366_v18 }
  0xa4   :  { %398 = vst [vmem:[%s696_s4] sm:$0xff] %v382_v20 }
  0xa5   :  { %402 = vst [vmem:[%s696_s4 + $0x20] sm:$0xff] %v386_v21 }
  0xa6   :  { %v195_v24 = vpop.f32.mrf.mxu2 }
  0xa7   :  { %v370_v25 = vmul.f32 %v325_v19, %v195_v24  ;;  %v205_v26 = vpop.f32.mrf.mxu3  ;;  %v177_v27 = vpop.f32.mrf.mxu0 }
  0xa8   :  { %v374_v28 = vmul.f32 %v345_v23, %v205_v26  ;;  %v363_v29 = vmul.f32 %v290_v7, %v177_v27  ;;  %v187_v30 = vpop.f32.mrf.mxu1 }
  0xa9   :  { %v390_v31 = vadd.f32 %v626_v14, %v370_v25  ;;  %v367_v32 = vmul.f32 %v310_v11, %v187_v30 }
  0xaa   :  { %v394_v33 = vadd.f32 %v626_v14, %v374_v28  ;;  %v383_v34 = vadd.f32 %v626_v14, %v363_v29 }
  0xab   :  { %406 = vst [vmem:[%s696_s4 + $0x40] sm:$0xff] %v390_v31  ;;  %v387_v35 = vadd.f32 %v626_v14, %v367_v32 }
  0xac   :  { %410 = vst [vmem:[%s696_s4 + $0x60] sm:$0xff] %v394_v33 }
  0xad   :  { %399 = vst [vmem:[%s696_s4 + $0x8] sm:$0xff] %v383_v34 }
  0xae   :  { %403 = vst [vmem:[%s696_s4 + $0x28] sm:$0xff] %v387_v35  ;;  %v197_v38 = vpop.f32.mrf.mxu2 }
  0xaf   :  { %v371_v39 = vmul.f32 %v330_v13, %v197_v38  ;;  %v207_v40 = vpop.f32.mrf.mxu3  ;;  %v180_v41 = vpop.f32.mrf.mxu0 }
  0xb0   :  { %v375_v42 = vmul.f32 %v350_v37, %v207_v40  ;;  %v364_v43 = vmul.f32 %v295_v6, %v180_v41  ;;  %v190_v44 = vpop.f32.mrf.mxu1 }
  0xb1   :  { %v391_v45 = vadd.f32 %v626_v14, %v371_v39  ;;  %v368_v46 = vmul.f32 %v315_v10, %v190_v44 }
  0xb2   :  { %v395_v47 = vadd.f32 %v626_v14, %v375_v42  ;;  %v384_v48 = vadd.f32 %v626_v14, %v364_v43 }
  0xb3   :  { %407 = vst [vmem:[%s696_s4 + $0x48] sm:$0xff] %v391_v45  ;;  %v388_v49 = vadd.f32 %v626_v14, %v368_v46 }
  0xb4   :  { %411 = vst [vmem:[%s696_s4 + $0x68] sm:$0xff] %v395_v47 }
  0xb5   :  { %400 = vst [vmem:[%s696_s4 + $0x10] sm:$0xff] %v384_v48 }
  0xb6   :  { %404 = vst [vmem:[%s696_s4 + $0x30] sm:$0xff] %v388_v49  ;;  %v200_v51 = vpop.f32.mrf.mxu2 }
  0xb7   :  { %v372_v52 = vmul.f32 %v335_v22, %v200_v51  ;;  %v210_v53 = vpop.f32.mrf.mxu3  ;;  %v182_v54 = vpop.f32.mrf.mxu0 }
  0xb8   :  { %v376_v55 = vmul.f32 %v355_v50, %v210_v53  ;;  %v365_v56 = vmul.f32 %v300_v9, %v182_v54  ;;  %v192_v57 = vpop.f32.mrf.mxu1 }
  0xb9   :  { %v392_v58 = vadd.f32 %v626_v14, %v372_v52  ;;  %v369_v59 = vmul.f32 %v320_v12, %v192_v57 }
  0xba   :  { %v396_v60 = vadd.f32 %v626_v14, %v376_v55  ;;  %v385_v61 = vadd.f32 %v626_v14, %v365_v56 }
  0xbb   :  { %408 = vst [vmem:[%s696_s4 + $0x50] sm:$0xff] %v392_v58  ;;  %v389_v62 = vadd.f32 %v626_v14, %v369_v59 }
  0xbc   :  { %412 = vst [vmem:[%s696_s4 + $0x70] sm:$0xff] %v396_v60 }
  0xbd   :  { %401 = vst [vmem:[%s696_s4 + $0x18] sm:$0xff] %v385_v61 }
  0xbe   :  { %405 = vst [vmem:[%s696_s4 + $0x38] sm:$0xff] %v389_v62  ;;  %v202_v63 = vpop.f32.mrf.mxu2 }
  0xbf   :  { %v373_v1 = vmul.f32 %v340_v36, %v202_v63  ;;  %v212_v2 = vpop.f32.mrf.mxu3 }
  0xc0   :  { %v377_v3 = vmul.f32 %v360_v0, %v212_v2 }
  0xc1   :  { %v393_v4 = vadd.f32 %v626_v14, %v373_v1 }
  0xc2   :  { %v397_v5 = vadd.f32 %v626_v14, %v377_v3 }
  0xc3   :  { %409 = vst [vmem:[%s696_s4 + $0x58] sm:$0xff] %v393_v4 }
  0xc4   :  { %413 = vst [vmem:[%s696_s4 + $0x78] sm:$0xff] %v397_v5 }

// kernel: run.25
= control target key start
LH: loop header
LB: loop body
LE: loop exit
PB: predicated region body
PF: predicated region fallthrough
CT: control target
= control target key end

     0   :  { %s746_s1 = inlined_call_operand.vmem [shape: bf16[128,128], index: 1, kind: input, shape index: {}]   ;;  %s747_s2 = inlined_call_operand.vmem [shape: f32[1,128], index: 2, kind: input, shape index: {}]   ;;  %s748_s0 = inlined_call_operand.vmem [shape: f32[128,128], index: 0, kind: input, shape index: {}]   ;;  %s749_s3 = inlined_call_operand.vmem [shape: bf16[128,128], index: 3, kind: input, shape index: {}]   ;;  %s750_s4 = inlined_call_operand.vmem [shape: f32[1,128], index: 4, kind: input, shape index: {}]   ;;  %s751_s5 = inlined_call_operand.vmem [shape: f32[128,128], index: 5, kind: output, shape index: {}]  }
   0x1   :  { %v489_v0 = vld [vmem:[%s746_s1 + $0x38] sm:$0xff]  ;;  %v488_v1 = vld [vmem:[%s746_s1 + $0x30] sm:$0xff]  ;;  %v487_v2 = vld [vmem:[%s746_s1 + $0x28] sm:$0xff] }
   0x2   :  { %112 = vmatpush.bf16.msra.mxu0 %v489_v0  ;;  %498 = vmatpush.bf16.msra.mxu2 %v489_v0  ;;  %v486_v3 = vld [vmem:[%s746_s1 + $0x20] sm:$0xff]  ;;  %v485_v4 = vld [vmem:[%s746_s1 + $0x18] sm:$0xff]  ;;  %v484_v5 = vld [vmem:[%s746_s1 + $0x10] sm:$0xff] }
   0x3   :  { %v483_v6 = vld [vmem:[%s746_s1 + $0x8] sm:$0xff]  ;;  %v482_v7 = vld [vmem:[%s746_s1] sm:$0xff]  ;;  %v22_v14 = vld [vmem:[%s748_s0 + $0x10] sm:$0xff] }
   0x4   :  { %v20_v8 = vld [vmem:[%s748_s0] sm:$0xff]  ;;  %v21_v9 = vld [vmem:[%s748_s0 + $0x8] sm:$0xff]  ;;  %v23_v15 = vld [vmem:[%s748_s0 + $0x18] sm:$0xff] }
   0x5   :  { %v28_v10 = vld [vmem:[%s748_s0 + $0x40] sm:$0xff]  ;;  %v29_v11 = vld [vmem:[%s748_s0 + $0x48] sm:$0xff]  ;;  %v36_v12 = vpack.c.bf16 %v21_v9, %v20_v8  ;;  %v30_v16 = vld [vmem:[%s748_s0 + $0x50] sm:$0xff]  ;;  %v37_v18 = vpack.c.bf16 %v23_v15, %v22_v14 }
   0x6   :  { %113 = vmatpush.bf16.msra.mxu0 %v488_v1  ;;  %499 = vmatpush.bf16.msra.mxu2 %v488_v1  ;;  %v40_v13 = vpack.c.bf16 %v29_v11, %v28_v10  ;;  %v31_v17 = vld [vmem:[%s748_s0 + $0x58] sm:$0xff]  ;;  %v24_v21 = vld [vmem:[%s748_s0 + $0x20] sm:$0xff]  ;;  %v25_v22 = vld [vmem:[%s748_s0 + $0x28] sm:$0xff] }
   0x7   :  { %v41_v19 = vpack.c.bf16 %v31_v17, %v30_v16  ;;  %v497_v20 = vld [vmem:[%s749_s3 + $0x38] sm:$0xff]  ;;  %v32_v23 = vld [vmem:[%s748_s0 + $0x60] sm:$0xff]  ;;  %v33_v24 = vld [vmem:[%s748_s0 + $0x68] sm:$0xff]  ;;  %v38_v25 = vpack.c.bf16 %v25_v22, %v24_v21 }
   0x8   :  { %333 = vmatpush.bf16.msra.mxu1 %v497_v20  ;;  %506 = vmatpush.bf16.msra.mxu3 %v497_v20  ;;  %v42_v26 = vpack.c.bf16 %v33_v24, %v32_v23  ;;  %v26_v27 = vld [vmem:[%s748_s0 + $0x30] sm:$0xff]  ;;  %v27_v28 = vld [vmem:[%s748_s0 + $0x38] sm:$0xff]  ;;  %v495_v34 = vld [vmem:[%s749_s3 + $0x28] sm:$0xff] }
   0x9   :  { %v34_v29 = vld [vmem:[%s748_s0 + $0x70] sm:$0xff]  ;;  %v35_v30 = vld [vmem:[%s748_s0 + $0x78] sm:$0xff]  ;;  %v39_v31 = vpack.c.bf16 %v27_v28, %v26_v27  ;;  %v494_v35 = vld [vmem:[%s749_s3 + $0x20] sm:$0xff] }
   0xa   :  { %114 = vmatpush.bf16.msra.mxu0 %v487_v2  ;;  %500 = vmatpush.bf16.msra.mxu2 %v487_v2  ;;  %v43_v32 = vpack.c.bf16 %v35_v30, %v34_v29  ;;  %v496_v33 = vld [vmem:[%s749_s3 + $0x30] sm:$0xff]  ;;  %v493_v36 = vld [vmem:[%s749_s3 + $0x18] sm:$0xff]  ;;  %v491_v38 = vld [vmem:[%s749_s3 + $0x8] sm:$0xff] }
   0xb   :  { %v492_v37 = vld [vmem:[%s749_s3 + $0x10] sm:$0xff]  ;;  %v490_v39 = vld [vmem:[%s749_s3] sm:$0xff] }
   0xc   :  { %334 = vmatpush.bf16.msra.mxu1 %v496_v33  ;;  %507 = vmatpush.bf16.msra.mxu3 %v496_v33  ;;  %v677_v40 = vld [vmem:[%s747_s2] ss:$0 sm:$0xff] }
   0xe   :  { %115 = vmatpush.bf16.msra.mxu0 %v486_v3  ;;  %501 = vmatpush.bf16.msra.mxu2 %v486_v3 }
  0x10   :  { %335 = vmatpush.bf16.msra.mxu1 %v495_v34  ;;  %508 = vmatpush.bf16.msra.mxu3 %v495_v34 }
  0x12   :  { %116 = vmatpush.bf16.msra.mxu0 %v485_v4  ;;  %502 = vmatpush.bf16.msra.mxu2 %v485_v4 }
  0x14   :  { %336 = vmatpush.bf16.msra.mxu1 %v494_v35  ;;  %509 = vmatpush.bf16.msra.mxu3 %v494_v35 }
  0x16   :  { %117 = vmatpush.bf16.msra.mxu0 %v484_v5  ;;  %503 = vmatpush.bf16.msra.mxu2 %v484_v5 }
  0x18   :  { %337 = vmatpush.bf16.msra.mxu1 %v493_v36  ;;  %510 = vmatpush.bf16.msra.mxu3 %v493_v36 }
  0x1a   :  { %118 = vmatpush.bf16.msra.mxu0 %v483_v6  ;;  %504 = vmatpush.bf16.msra.mxu2 %v483_v6 }
  0x1c   :  { %338 = vmatpush.bf16.msra.mxu1 %v492_v37  ;;  %511 = vmatpush.bf16.msra.mxu3 %v492_v37 }
  0x1e   :  { %119 = vmatpush.bf16.msra.mxu0 %v482_v7  ;;  %505 = vmatpush.bf16.msra.mxu2 %v482_v7 }
  0x20   :  { %339 = vmatpush.bf16.msra.mxu1 %v491_v38  ;;  %512 = vmatpush.bf16.msra.mxu3 %v491_v38 }
  0x21   :  { %120 = vmatmul.bf16.vlgmr.msra.gmra.mxu0 %v36_v12  ;;  %140 = vmatmul.bf16.vlgmr.msra.gmra.mxu2 %v40_v13 }
  0x24   :  { %340 = vmatpush.bf16.msra.mxu1 %v490_v39  ;;  %513 = vmatpush.bf16.msra.mxu3 %v490_v39 }
  0x31   :  { %125 = vmatmul.bf16.gmra.mxu0 %v37_v18  ;;  %145 = vmatmul.bf16.gmra.mxu2 %v41_v19 }
  0x41   :  { %130 = vmatmul.bf16.gmra.mxu0 %v38_v25  ;;  %150 = vmatmul.bf16.gmra.mxu2 %v42_v26 }
  0x51   :  { %135 = vmatmul.bf16.gmra.mxu0 %v39_v31  ;;  %155 = vmatmul.bf16.gmra.mxu2 %v43_v32 }
  0x9e   :  { %v121_v41 = vpop.f32.mrf.mxu0 }
  0x9f   :  { %v122_v42 = vadd.f32 %v677_v40, %v121_v41 }
  0xa1   :  { %v177_v43 = vmin.f32 %v122_v42, 0.0  ;;  %vm161_vm0 = vcmp.gt.f32.partialorder %v122_v42, 0.0 }
  0xa3   :  { %v193_v45 = vmul.f32 1.442695, %v177_v43 }
  0xa4   :  { %v141_v44 = vpop.f32.mrf.mxu2 }
  0xa5   :  { %v142_v46 = vadd.f32 %v677_v40, %v141_v44  ;;  %516 = vpow2.f32 %v193_v45 }
  0xa6   :  { %v123_v47 = vpop.f32.mrf.mxu0 }
  0xa7   :  { %v185_v48 = vmin.f32 %v142_v46, 0.0  ;;  %v124_v49 = vadd.f32 %v677_v40, %v123_v47  ;;  %vm169_vm2 = vcmp.gt.f32.partialorder %v142_v46, 0.0 }
  0xa9   :  { %v178_v50 = vmin.f32 %v124_v49, 0.0  ;;  %v209_v51 = vmul.f32 1.442695, %v185_v48  ;;  %vm162_vm1 = vcmp.gt.f32.partialorder %v124_v49, 0.0 }
  0xab   :  { %v195_v52 = vmul.f32 1.442695, %v178_v50  ;;  %v517_v56 = vpop.eup %516 }
  0xac   :  { %v143_v53 = vpop.f32.mrf.mxu2  ;;  %v434_v61 = vadd.f32 -1.0, %v517_v56 }
  0xad   :  { %518 = vpow2.f32 %v195_v52  ;;  %v144_v54 = vadd.f32 %v677_v40, %v143_v53 }
  0xae   :  { %v126_v55 = vpop.f32.mrf.mxu0  ;;  %520 = vpow2.f32 %v209_v51  ;;  %v241_v5 = vsel %vm161_vm0, %v122_v42, %v434_v61 }
  0xaf   :  { %v186_v57 = vmin.f32 %v144_v54, 0.0  ;;  %v127_v58 = vadd.f32 %v677_v40, %v126_v55  ;;  %vm170_vm3 = vcmp.gt.f32.partialorder %v144_v54, 0.0 }
  0xb1   :  { %v211_v59 = vmul.f32 1.442695, %v186_v57  ;;  %v179_v60 = vmin.f32 %v127_v58, 0.0  ;;  %vm163_vm4 = vcmp.gt.f32.partialorder %v127_v58, 0.0 }
  0xb3   :  { %v519_v62 = vpop.eup %518  ;;  %522 = vpow2.f32 %v211_v59  ;;  %v197_v2 = vmul.f32 1.442695, %v179_v60 }
  0xb4   :  { %v146_v63 = vpop.f32.mrf.mxu2  ;;  %v435_v0 = vadd.f32 -1.0, %v519_v62  ;;  %v521_v1 = vpop.eup %520 }
  0xb5   :  { %v147_v3 = vadd.f32 %v677_v40, %v146_v63  ;;  %v442_v10 = vadd.f32 -1.0, %v521_v1  ;;  %524 = vpow2.f32 %v197_v2 }
  0xb6   :  { %v128_v4 = vpop.f32.mrf.mxu0  ;;  %v242_v6 = vsel %vm162_vm1, %v124_v49, %v435_v0 }
  0xb7   :  { %v187_v7 = vmin.f32 %v147_v3, 0.0  ;;  %v129_v8 = vadd.f32 %v677_v40, %v128_v4  ;;  %v257_v9 = vpack.c.bf16 %v242_v6, %v241_v5  ;;  %v249_v17 = vsel %vm169_vm2, %v142_v46, %v442_v10 }
  0xb8   :  { %vm171_vm6 = vcmp.gt.f32.partialorder %v147_v3, 0.0 }
  0xb9   :  { %v523_v11 = vpop.eup %522  ;;  %v180_v12 = vmin.f32 %v129_v8, 0.0  ;;  %341 = vmatmul.bf16.vlgmr.msra.gmra.mxu1 %v257_v9  ;;  %v213_v14 = vmul.f32 1.442695, %v187_v7  ;;  %vm164_vm5 = vcmp.gt.f32.partialorder %v129_v8, 0.0 }
  0xba   :  { %v443_v13 = vadd.f32 -1.0, %v523_v11 }
  0xbb   :  { %v199_v15 = vmul.f32 1.442695, %v180_v12  ;;  %v525_v22 = vpop.eup %524 }
  0xbc   :  { %v148_v16 = vpop.f32.mrf.mxu2  ;;  %v250_v18 = vsel %vm170_vm3, %v144_v54, %v443_v13  ;;  %v436_v27 = vadd.f32 -1.0, %v525_v22 }
  0xbd   :  { %526 = vpow2.f32 %v199_v15  ;;  %v149_v19 = vadd.f32 %v677_v40, %v148_v16  ;;  %v261_v20 = vpack.c.bf16 %v250_v18, %v249_v17 }
  0xbe   :  { %v131_v21 = vpop.f32.mrf.mxu0  ;;  %528 = vpow2.f32 %v213_v14  ;;  %v243_v35 = vsel %vm163_vm4, %v127_v58, %v436_v27 }
  0xbf   :  { %v188_v23 = vmin.f32 %v149_v19, 0.0  ;;  %v132_v24 = vadd.f32 %v677_v40, %v131_v21  ;;  %361 = vmatmul.bf16.vlgmr.msra.gmra.mxu3 %v261_v20  ;;  %vm172_vm7 = vcmp.gt.f32.partialorder %v149_v19, 0.0 }
  0xc1   :  { %v215_v25 = vmul.f32 1.442695, %v188_v23  ;;  %v181_v26 = vmin.f32 %v132_v24, 0.0  ;;  %vm165_vm8 = vcmp.gt.f32.partialorder %v132_v24, 0.0 }
  0xc3   :  { %v527_v28 = vpop.eup %526  ;;  %530 = vpow2.f32 %v215_v25  ;;  %v201_v32 = vmul.f32 1.442695, %v181_v26 }
  0xc4   :  { %v151_v29 = vpop.f32.mrf.mxu2  ;;  %v437_v30 = vadd.f32 -1.0, %v527_v28  ;;  %v529_v31 = vpop.eup %528 }
  0xc5   :  { %v152_v33 = vadd.f32 %v677_v40, %v151_v29  ;;  %v444_v41 = vadd.f32 -1.0, %v529_v31  ;;  %532 = vpow2.f32 %v201_v32 }
  0xc6   :  { %v133_v34 = vpop.f32.mrf.mxu0  ;;  %v244_v36 = vsel %vm164_vm5, %v129_v8, %v437_v30 }
  0xc7   :  { %v189_v37 = vmin.f32 %v152_v33, 0.0  ;;  %v134_v38 = vadd.f32 %v677_v40, %v133_v34  ;;  %v258_v39 = vpack.c.bf16 %v244_v36, %v243_v35  ;;  %v251_v48 = vsel %vm171_vm6, %v147_v3, %v444_v41 }
  0xc8   :  { %vm173_vm10 = vcmp.gt.f32.partialorder %v152_v33, 0.0 }
  0xc9   :  { %v531_v42 = vpop.eup %530  ;;  %v182_v43 = vmin.f32 %v134_v38, 0.0  ;;  %346 = vmatmul.bf16.gmra.mxu1 %v258_v39  ;;  %v217_v45 = vmul.f32 1.442695, %v189_v37  ;;  %vm166_vm9 = vcmp.gt.f32.partialorder %v134_v38, 0.0 }
  0xca   :  { %v445_v44 = vadd.f32 -1.0, %v531_v42 }
  0xcb   :  { %v203_v46 = vmul.f32 1.442695, %v182_v43  ;;  %v533_v53 = vpop.eup %532 }
  0xcc   :  { %v153_v47 = vpop.f32.mrf.mxu2  ;;  %v252_v49 = vsel %vm172_vm7, %v149_v19, %v445_v44  ;;  %v438_v58 = vadd.f32 -1.0, %v533_v53 }
  0xcd   :  { %534 = vpow2.f32 %v203_v46  ;;  %v154_v50 = vadd.f32 %v677_v40, %v153_v47  ;;  %v262_v51 = vpack.c.bf16 %v252_v49, %v251_v48 }
  0xce   :  { %v136_v52 = vpop.f32.mrf.mxu0  ;;  %536 = vpow2.f32 %v217_v45  ;;  %v245_v2 = vsel %vm165_vm8, %v132_v24, %v438_v58 }
  0xcf   :  { %v190_v54 = vmin.f32 %v154_v50, 0.0  ;;  %v137_v55 = vadd.f32 %v677_v40, %v136_v52  ;;  %366 = vmatmul.bf16.gmra.mxu3 %v262_v51  ;;  %vm174_vm11 = vcmp.gt.f32.partialorder %v154_v50, 0.0 }
  0xd1   :  { %v219_v56 = vmul.f32 1.442695, %v190_v54  ;;  %v183_v57 = vmin.f32 %v137_v55, 0.0  ;;  %vm167_vm12 = vcmp.gt.f32.partialorder %v137_v55, 0.0 }
  0xd3   :  { %v535_v59 = vpop.eup %534  ;;  %538 = vpow2.f32 %v219_v56  ;;  %v205_v63 = vmul.f32 1.442695, %v183_v57 }
  0xd4   :  { %v156_v60 = vpop.f32.mrf.mxu2  ;;  %v439_v61 = vadd.f32 -1.0, %v535_v59  ;;  %v537_v62 = vpop.eup %536 }
  0xd5   :  { %v157_v0 = vadd.f32 %v677_v40, %v156_v60  ;;  %v446_v7 = vadd.f32 -1.0, %v537_v62  ;;  %540 = vpow2.f32 %v205_v63 }
  0xd6   :  { %v138_v1 = vpop.f32.mrf.mxu0  ;;  %v246_v3 = vsel %vm166_vm9, %v134_v38, %v439_v61 }
  0xd7   :  { %v191_v4 = vmin.f32 %v157_v0, 0.0  ;;  %v139_v5 = vadd.f32 %v677_v40, %v138_v1  ;;  %v259_v6 = vpack.c.bf16 %v246_v3, %v245_v2  ;;  %v253_v14 = vsel %vm173_vm10, %v152_v33, %v446_v7  ;;  %v515_v33 = vld [vmem:[%s750_s4] ss:$0 sm:$0xff] }
  0xd8   :  { %vm175_vm14 = vcmp.gt.f32.partialorder %v157_v0, 0.0 }
  0xd9   :  { %v539_v8 = vpop.eup %538  ;;  %v184_v9 = vmin.f32 %v139_v5, 0.0  ;;  %351 = vmatmul.bf16.gmra.mxu1 %v259_v6  ;;  %v221_v11 = vmul.f32 1.442695, %v191_v4  ;;  %vm168_vm13 = vcmp.gt.f32.partialorder %v139_v5, 0.0 }
  0xda   :  { %v447_v10 = vadd.f32 -1.0, %v539_v8 }
  0xdb   :  { %v207_v12 = vmul.f32 1.442695, %v184_v9  ;;  %v541_v18 = vpop.eup %540 }
  0xdc   :  { %v158_v13 = vpop.f32.mrf.mxu2  ;;  %v254_v15 = vsel %vm174_vm11, %v154_v50, %v447_v10  ;;  %v440_v21 = vadd.f32 -1.0, %v541_v18 }
  0xdd   :  { %542 = vpow2.f32 %v207_v12  ;;  %v159_v16 = vadd.f32 %v677_v40, %v158_v13  ;;  %v263_v17 = vpack.c.bf16 %v254_v15, %v253_v14 }
  0xde   :  { %544 = vpow2.f32 %v221_v11  ;;  %v247_v25 = vsel %vm167_vm12, %v137_v55, %v440_v21 }
  0xdf   :  { %v192_v19 = vmin.f32 %v159_v16, 0.0  ;;  %371 = vmatmul.bf16.gmra.mxu3 %v263_v17  ;;  %vm176_vm15 = vcmp.gt.f32.partialorder %v159_v16, 0.0 }
  0xe1   :  { %v223_v20 = vmul.f32 1.442695, %v192_v19 }
  0xe3   :  { %v543_v22 = vpop.eup %542  ;;  %546 = vpow2.f32 %v223_v20 }
  0xe4   :  { %v441_v23 = vadd.f32 -1.0, %v543_v22  ;;  %v545_v24 = vpop.eup %544 }
  0xe5   :  { %v448_v28 = vadd.f32 -1.0, %v545_v24 }
  0xe6   :  { %v248_v26 = vsel %vm168_vm13, %v139_v5, %v441_v23 }
  0xe7   :  { %v260_v27 = vpack.c.bf16 %v248_v26, %v247_v25  ;;  %v255_v30 = vsel %vm175_vm14, %v157_v0, %v448_v28 }
  0xe9   :  { %v547_v29 = vpop.eup %546  ;;  %356 = vmatmul.bf16.gmra.mxu1 %v260_v27 }
  0xea   :  { %v449_v40 = vadd.f32 -1.0, %v547_v29 }
  0xec   :  { %v256_v31 = vsel %vm176_vm15, %v159_v16, %v449_v40 }
  0xed   :  { %v264_v32 = vpack.c.bf16 %v256_v31, %v255_v30 }
  0xef   :  { %376 = vmatmul.bf16.gmra.mxu3 %v264_v32 }
 0x136   :  { %v342_v34 = vpop.f32.mrf.mxu1 }
 0x137   :  { %v343_v35 = vadd.f32 %v515_v33, %v342_v34 }
 0x139   :  { %382 = vst [vmem:[%s751_s5] sm:$0xff] %v343_v35 }
 0x13e   :  { %v344_v36 = vpop.f32.mrf.mxu1 }
 0x13f   :  { %v345_v37 = vadd.f32 %v515_v33, %v344_v36 }
 0x141   :  { %383 = vst [vmem:[%s751_s5 + $0x8] sm:$0xff] %v345_v37 }
 0x142   :  { %v362_v38 = vpop.f32.mrf.mxu3 }
 0x143   :  { %v363_v39 = vadd.f32 %v515_v33, %v362_v38 }
 0x145   :  { %390 = vst [vmem:[%s751_s5 + $0x40] sm:$0xff] %v363_v39 }
 0x146   :  { %v347_v41 = vpop.f32.mrf.mxu1 }
 0x147   :  { %v348_v42 = vadd.f32 %v515_v33, %v347_v41 }
 0x149   :  { %384 = vst [vmem:[%s751_s5 + $0x10] sm:$0xff] %v348_v42 }
 0x14a   :  { %v364_v43 = vpop.f32.mrf.mxu3 }
 0x14b   :  { %v365_v44 = vadd.f32 %v515_v33, %v364_v43 }
 0x14d   :  { %391 = vst [vmem:[%s751_s5 + $0x48] sm:$0xff] %v365_v44 }
 0x14e   :  { %v349_v45 = vpop.f32.mrf.mxu1 }
 0x14f   :  { %v350_v46 = vadd.f32 %v515_v33, %v349_v45 }
 0x151   :  { %385 = vst [vmem:[%s751_s5 + $0x18] sm:$0xff] %v350_v46 }
 0x152   :  { %v367_v47 = vpop.f32.mrf.mxu3 }
 0x153   :  { %v368_v48 = vadd.f32 %v515_v33, %v367_v47 }
 0x155   :  { %392 = vst [vmem:[%s751_s5 + $0x50] sm:$0xff] %v368_v48 }
 0x156   :  { %v352_v49 = vpop.f32.mrf.mxu1 }
 0x157   :  { %v353_v50 = vadd.f32 %v515_v33, %v352_v49 }
 0x159   :  { %386 = vst [vmem:[%s751_s5 + $0x20] sm:$0xff] %v353_v50 }
 0x15a   :  { %v369_v51 = vpop.f32.mrf.mxu3 }
 0x15b   :  { %v370_v52 = vadd.f32 %v515_v33, %v369_v51 }
 0x15d   :  { %393 = vst [vmem:[%s751_s5 + $0x58] sm:$0xff] %v370_v52 }
 0x15e   :  { %v354_v53 = vpop.f32.mrf.mxu1 }
 0x15f   :  { %v355_v54 = vadd.f32 %v515_v33, %v354_v53 }
 0x161   :  { %387 = vst [vmem:[%s751_s5 + $0x28] sm:$0xff] %v355_v54 }
 0x162   :  { %v372_v55 = vpop.f32.mrf.mxu3 }
 0x163   :  { %v373_v56 = vadd.f32 %v515_v33, %v372_v55 }
 0x165   :  { %394 = vst [vmem:[%s751_s5 + $0x60] sm:$0xff] %v373_v56 }
 0x166   :  { %v357_v57 = vpop.f32.mrf.mxu1 }
 0x167   :  { %v358_v58 = vadd.f32 %v515_v33, %v357_v57 }
 0x169   :  { %388 = vst [vmem:[%s751_s5 + $0x30] sm:$0xff] %v358_v58 }
 0x16a   :  { %v374_v59 = vpop.f32.mrf.mxu3 }
 0x16b   :  { %v375_v60 = vadd.f32 %v515_v33, %v374_v59 }
 0x16d   :  { %395 = vst [vmem:[%s751_s5 + $0x68] sm:$0xff] %v375_v60 }
 0x16e   :  { %v359_v61 = vpop.f32.mrf.mxu1 }
 0x16f   :  { %v360_v62 = vadd.f32 %v515_v33, %v359_v61 }
 0x171   :  { %389 = vst [vmem:[%s751_s5 + $0x38] sm:$0xff] %v360_v62 }
 0x172   :  { %v377_v63 = vpop.f32.mrf.mxu3 }
 0x173   :  { %v378_v0 = vadd.f32 %v515_v33, %v377_v63 }
 0x175   :  { %396 = vst [vmem:[%s751_s5 + $0x70] sm:$0xff] %v378_v0 }
 0x17a   :  { %v379_v1 = vpop.f32.mrf.mxu3 }
 0x17b   :  { %v380_v2 = vadd.f32 %v515_v33, %v379_v1 }
 0x17d   :  { %397 = vst [vmem:[%s751_s5 + $0x78] sm:$0xff] %v380_v2 }

</bundles_post_ra>
